<compile_context>
chip_gen: v6e
topology: v6e:2x2x1
jax: 0.10.0
libtpu: 0.0.40
codegen_flags: <defaults>
</compile_context>

<pallas_src>
import numpy as np
import jax
import jax.numpy as jnp
from jax.experimental import pallas as pl
from jax.experimental.pallas import tpu as pltpu

# ----------------------------- configuration -------------------------------
BATCH = 2
CIN = 3          # conv1 input channels (fixed by the module)
CHS = 16         # channel_num (small synthetic config)
IMG = 16         # img_size    (small synthetic config)
KS = 3
EPS = 1e-5

H_IN, W_IN = IMG, IMG
H1, W1 = H_IN - KS + 1, W_IN - KS + 1      # 14, 14  (conv1 output)
H2, W2 = H1 - KS + 1, W1 - KS + 1          # 12, 12  (conv2 output)
PH, PW = H2 // 2, W2 // 2                  # 6, 6    (after MaxPool2d(2,2))
FC_IN = CHS * PH * PW                      # 576
FC_HID = 512
NCLASS = 10


# ------------------------------ fused kernel -------------------------------

def _fused_cnn_kernel(x_ref, wt1_ref, s1_ref, b1_ref,
                      wt2e_ref, wt2o_ref, s2_ref, b2_ref,
                      p1_ref, fb1_ref, w4_ref, fb4_ref,
                      o_ref, y1_s, hp_s, pool_s):
    f32, bf16 = jnp.float32, jnp.bfloat16

    # ---- conv1 + BN + ReLU  ->  (H1, W1*CHS) = (14, 224) ------------------
    acc1 = jnp.dot(x_ref[0, 0:H1, :].astype(bf16), wt1_ref[0],
                   preferred_element_type=f32)
    for ky in range(1, KS):
        lhs = x_ref[0, ky:ky + H1, :].astype(bf16)                 # (14, 48)
        acc1 = acc1 + jnp.dot(lhs, wt1_ref[ky],
                              preferred_element_type=f32)
    y1_s[...] = jnp.maximum(acc1 * s1_ref[...] + b1_ref[...], 0.0)

    # ---- conv2 (even/odd output columns) + BN + ReLU ----------------------
    lhs0 = y1_s[0:H2, :].astype(bf16)                              # (12, 224)
    acc2e = jnp.dot(lhs0, wt2e_ref[0], preferred_element_type=f32)
    acc2o = jnp.dot(lhs0, wt2o_ref[0], preferred_element_type=f32)
    for ky in range(1, KS):
        lhs = y1_s[ky:ky + H2, :].astype(bf16)                     # (12, 224)
        acc2e = acc2e + jnp.dot(lhs, wt2e_ref[ky],
                                preferred_element_type=f32)
        acc2o = acc2o + jnp.dot(lhs, wt2o_ref[ky],
                                preferred_element_type=f32)
    y2e = jnp.maximum(acc2e * s2_ref[...] + b2_ref[...], 0.0)
    y2o = jnp.maximum(acc2o * s2_ref[...] + b2_ref[...], 0.0)

    # ---- MaxPool2d(2,2), fused: horizontal max is element-wise (even vs odd
    # columns), vertical max is a stride-2 sublane read of the scratch.
    hp_s[...] = jnp.maximum(y2e, y2o)                              # (12, 96)
    pool_s[...] = jnp.maximum(hp_s[pl.ds(0, PH, 2), :],
                              hp_s[pl.ds(1, PH, 2), :])            # (6, 96)

    # ---- fc1 + bias + ReLU (weights pre-permuted to pooled layout) --------
    accf = jnp.dot(pool_s[0:1, :].astype(bf16), p1_ref[0],
                   preferred_element_type=f32)
    for i in range(1, PH):
        accf = accf + jnp.dot(pool_s[i:i + 1, :].astype(bf16), p1_ref[i],
                              preferred_element_type=f32)
    h1 = jnp.maximum(accf + fb1_ref[...], 0.0)                     # (1, 512)
    # drop_val=0 -> Dropout is identity; fc_num=2 -> fc2/fc3 skipped.

    # ---- fc4 + softmax(dim=1) ---------------------------------------------
    logits = jnp.dot(h1.astype(bf16), w4_ref[...],
                     preferred_element_type=f32) + fb4_ref[...]    # (1, 10)
    m = jnp.max(logits, axis=-1, keepdims=True)
    e = jnp.exp(logits - m)
    s = jnp.sum(e, axis=-1, keepdims=True)
    o_ref[0] = e * pl.reciprocal(s, approx=True)


def cnn_custom_forward(x_nchw, packed):
    """x_nchw: (N, 3, IMG, IMG) float32 (PyTorch layout)."""
    n = x_nchw.shape[0]
    # tiny one-time input layout prep (6 KB): NCHW -> (N, H, W*CIN)
    x3 = jnp.transpose(x_nchw, (0, 2, 3, 1)).reshape(n, H_IN, W_IN * CIN)

    # Advisory cost estimate for the XLA scheduler (whole-batch numbers).
    flops_per_sample = (2 * H1 * (W1 * CHS) * (W_IN * CIN) * KS +
                        2 * H2 * (PW * CHS) * (W1 * CHS) * KS * 2 +
                        2 * FC_IN * FC_HID + 2 * FC_HID * NCLASS)
    weight_bytes = 2 * (KS * W_IN * CIN * W1 * CHS +
                        2 * KS * W1 * CHS * PW * CHS +
                        PH * PW * CHS * FC_HID + FC_HID * NCLASS)
    bytes_accessed = (weight_bytes + 4 * (2 * W1 * CHS + 2 * PW * CHS +
                                          FC_HID + NCLASS) +
                      n * (4 * H_IN * W_IN * CIN + 4 * NCLASS))
    cost = pl.CostEstimate(flops=n * flops_per_sample,
                           transcendentals=n * (NCLASS + 2),
                           bytes_accessed=bytes_accessed)

    out = pl.pallas_call(
        _fused_cnn_kernel,
        out_shape=jax.ShapeDtypeStruct((n, 1, NCLASS), jnp.float32),
        grid=(n,),
        in_specs=[
            pl.BlockSpec((1, H_IN, W_IN * CIN), lambda i: (i, 0, 0)),   # x
            pl.BlockSpec((KS, W_IN * CIN, W1 * CHS), lambda i: (0, 0, 0)),
            pl.BlockSpec((1, W1 * CHS), lambda i: (0, 0)),              # s1
            pl.BlockSpec((1, W1 * CHS), lambda i: (0, 0)),              # b1
            pl.BlockSpec((KS, W1 * CHS, PW * CHS), lambda i: (0, 0, 0)),
            pl.BlockSpec((KS, W1 * CHS, PW * CHS), lambda i: (0, 0, 0)),
            pl.BlockSpec((1, PW * CHS), lambda i: (0, 0)),              # s2
            pl.BlockSpec((1, PW * CHS), lambda i: (0, 0)),              # b2
            pl.BlockSpec((PH, PW * CHS, FC_HID), lambda i: (0, 0, 0)),  # fc1 w
            pl.BlockSpec((1, FC_HID), lambda i: (0, 0)),                # fc1 b
            pl.BlockSpec((FC_HID, NCLASS), lambda i: (0, 0)),           # fc4 w
            pl.BlockSpec((1, NCLASS), lambda i: (0, 0)),                # fc4 b
        ],
        out_specs=pl.BlockSpec((1, 1, NCLASS), lambda i: (i, 0, 0)),
        scratch_shapes=[
            pltpu.VMEM((H1, W1 * CHS), jnp.float32),   # conv1 activation
            pltpu.VMEM((H2, PW * CHS), jnp.float32),   # half-pooled conv2 act
            pltpu.VMEM((PH, PW * CHS), jnp.float32),   # pooled features
        ],
        compiler_params=pltpu.CompilerParams(
            dimension_semantics=("parallel",)),
        cost_estimate=cost,
    )(x3, packed["wt1"], packed["s1"], packed["b1"],
      packed["wt2e"], packed["wt2o"], packed["s2"], packed["b2"],
      packed["p1"], packed["fb1"], packed["w4"], packed["fb4"])
    return out.reshape(n, NCLASS)


# ------------------------- parameter init / packing ------------------------

def init_params(key):
    """Logical (PyTorch-equivalent) parameters, f32 (BN in eval mode)."""
    k = jax.random.split(key, 16)
    p = {}
    # conv1 + BN1 (running stats), conv bias folded into BN scale/bias
    p["conv1_w"] = 0.1 * jax.random.normal(k[0], (KS, KS, CIN, CHS), jnp.float32)
    b = 0.1 * jax.random.normal(k[1], (CHS,), jnp.float32)
    g = 1.0 + 0.1 * jax.random.normal(k[2], (CHS,), jnp.float32)
    be = 0.1 * jax.random.normal(k[3], (CHS,), jnp.float32)
    mu = 0.1 * jax.random.normal(k[4], (CHS,), jnp.float32)
    vr = 0.5 + jax.random.uniform(k[5], (CHS,), jnp.float32)
    p["scale1"] = g / jnp.sqrt(vr + EPS)
    p["bias1"] = be + (b - mu) * p["scale1"]
    # conv2 + BN2
    p["conv2_w"] = 0.1 * jax.random.normal(k[6], (KS, KS, CHS, CHS), jnp.float32)
    b = 0.1 * jax.random.normal(k[7], (CHS,), jnp.float32)
    g = 1.0 + 0.1 * jax.random.normal(k[8], (CHS,), jnp.float32)
    be = 0.1 * jax.random.normal(k[9], (CHS,), jnp.float32)
    mu = 0.1 * jax.random.normal(k[10], (CHS,), jnp.float32)
    vr = 0.5 + jax.random.uniform(k[11], (CHS,), jnp.float32)
    p["scale2"] = g / jnp.sqrt(vr + EPS)
    p["bias2"] = be + (b - mu) * p["scale2"]
    # fc layers (fc1 rows follow torch.flatten(x,1) NCHW order: c*PH*PW+i*PW+j)
    p["fc1_w"] = 0.02 * jax.random.normal(k[12], (FC_IN, FC_HID), jnp.float32)
    p["fc1_b"] = 0.02 * jax.random.normal(k[13], (FC_HID,), jnp.float32)
    p["fc4_w"] = 0.02 * jax.random.normal(k[14], (FC_HID, NCLASS), jnp.float32)
    p["fc4_b"] = 0.02 * jax.random.normal(k[15], (NCLASS,), jnp.float32)
    return p


def pack_params(p):
    """One-time host-side packing: Toeplitz-expand convs, fold BN, permute fc1,
    cast matmul weights to bf16 (epilogue scale/bias stay f32)."""
    packed = {}
    # conv1: per-ky Toeplitz weight (W_IN*CIN, W1*CHS)
    w1 = np.asarray(p["conv1_w"], np.float32)
    t1 = np.zeros((KS, W_IN * CIN, W1 * CHS), np.float32)
    for ky in range(KS):
        for kx in range(KS):
            for wo in range(W1):
                wi = wo + kx
                t1[ky, wi * CIN:(wi + 1) * CIN,
                   wo * CHS:(wo + 1) * CHS] = w1[ky, kx]
    packed["wt1"] = jnp.asarray(t1, jnp.bfloat16)
    packed["s1"] = jnp.asarray(np.tile(np.asarray(p["scale1"]), W1)[None, :],
                               jnp.float32)
    packed["b1"] = jnp.asarray(np.tile(np.asarray(p["bias1"]), W1)[None, :],
                               jnp.float32)
    # conv2: even / odd output columns (horizontal-pool partners) separately
    w2 = np.asarray(p["conv2_w"], np.float32)
    t2e = np.zeros((KS, W1 * CHS, PW * CHS), np.float32)
    t2o = np.zeros((KS, W1 * CHS, PW * CHS), np.float32)
    for ky in range(KS):
        for kx in range(KS):
            for j in range(PW):
                wie, wio = 2 * j + kx, 2 * j + 1 + kx
                t2e[ky, wie * CHS:(wie + 1) * CHS,
                    j * CHS:(j + 1) * CHS] = w2[ky, kx]
                t2o[ky, wio * CHS:(wio + 1) * CHS,
                    j * CHS:(j + 1) * CHS] = w2[ky, kx]
    packed["wt2e"] = jnp.asarray(t2e, jnp.bfloat16)
    packed["wt2o"] = jnp.asarray(t2o, jnp.bfloat16)
    packed["s2"] = jnp.asarray(np.tile(np.asarray(p["scale2"]), PW)[None, :],
                               jnp.float32)
    packed["b2"] = jnp.asarray(np.tile(np.asarray(p["bias2"]), PW)[None, :],
                               jnp.float32)
    # fc1 weights permuted to pooled layout (i, j*CHS+c) -> no runtime transpose
    f1 = np.asarray(p["fc1_w"], np.float32).reshape(CHS, PH, PW, FC_HID)
    p1 = np.transpose(f1, (1, 2, 0, 3)).reshape(PH, PW * CHS, FC_HID)
    packed["p1"] = jnp.asarray(p1, jnp.bfloat16)
    packed["fb1"] = jnp.asarray(np.asarray(p["fc1_b"])[None, :], jnp.float32)
    packed["w4"] = jnp.asarray(p["fc4_w"], jnp.bfloat16)
    packed["fb4"] = jnp.asarray(np.asarray(p["fc4_b"])[None, :], jnp.float32)
    return packed


# ----------------------------- pure-JAX reference ---------------------------

def ref_forward(x_nchw, p):
    x = jnp.transpose(x_nchw, (0, 2, 3, 1)).astype(jnp.float32)
    y = jax.lax.conv_general_dilated(
        x, p["conv1_w"], (1, 1), "VALID",
        dimension_numbers=("NHWC", "HWIO", "NHWC"))
    y = jnp.maximum(y * p["scale1"] + p["bias1"], 0.0)
    y = jax.lax.conv_general_dilated(
        y, p["conv2_w"], (1, 1), "VALID",
        dimension_numbers=("NHWC", "HWIO", "NHWC"))
    y = jnp.maximum(y * p["scale2"] + p["bias2"], 0.0)          # (N,12,12,16)
    n = y.shape[0]
    y = y.reshape(n, PH, 2, PW, 2, CHS).max(axis=(2, 4))        # (N,6,6,16)
    y = jnp.transpose(y, (0, 3, 1, 2)).reshape(n, -1)           # NCHW flatten
    h = jnp.maximum(y @ p["fc1_w"] + p["fc1_b"], 0.0)
    logits = h @ p["fc4_w"] + p["fc4_b"]
    return jax.nn.softmax(logits, axis=-1)


# ----------------------------------- main -----------------------------------

if __name__ == "__main__":
    key = jax.random.PRNGKey(0)
    kx, kp = jax.random.split(key)
    x = jax.random.normal(kx, (BATCH, CIN, IMG, IMG), jnp.float32)

    logical = init_params(kp)
    packed = pack_params(logical)

    fwd = jax.jit(cnn_custom_forward)
    out = jax.block_until_ready(fwd(x, packed))

    assert out.shape == (BATCH, NCLASS), out.shape
    # rows are softmax probabilities (approx-reciprocal + bf16 matmuls)
    row_sums = jnp.sum(out, axis=1)
    assert bool(jnp.all(jnp.abs(row_sums - 1.0) < 2e-2)), row_sums
    # compare against a pure-f32 JAX reference
    ref = ref_forward(x, logical)
    err = float(jnp.max(jnp.abs(out - ref)))
    assert err < 3e-2, err
    print("KERNEL_OK")
</pallas_src>

<mosaic_0001>
module attributes {stable_mosaic.version = 11 : i64} {
  func.func @_fused_cnn_kernel(%arg0: i32, %arg1: memref<1x16x48xf32, #tpu.memory_space<vmem>>, %arg2: memref<3x48x224xbf16, #tpu.memory_space<vmem>>, %arg3: memref<1x224xf32, #tpu.memory_space<vmem>>, %arg4: memref<1x224xf32, #tpu.memory_space<vmem>>, %arg5: memref<3x224x96xbf16, #tpu.memory_space<vmem>>, %arg6: memref<3x224x96xbf16, #tpu.memory_space<vmem>>, %arg7: memref<1x96xf32, #tpu.memory_space<vmem>>, %arg8: memref<1x96xf32, #tpu.memory_space<vmem>>, %arg9: memref<6x96x512xbf16, #tpu.memory_space<vmem>>, %arg10: memref<1x512xf32, #tpu.memory_space<vmem>>, %arg11: memref<512x10xbf16, #tpu.memory_space<vmem>>, %arg12: memref<1x10xf32, #tpu.memory_space<vmem>>, %arg13: memref<1x1x10xf32, #tpu.memory_space<vmem>>, %arg14: memref<14x224xf32, #tpu.memory_space<vmem>>, %arg15: memref<12x96xf32, #tpu.memory_space<vmem>>, %arg16: memref<6x96xf32, #tpu.memory_space<vmem>>) attributes {dimension_semantics = [#tpu.dimension_semantics<parallel>], iteration_bounds = array<i64: 2>, scalar_prefetch = 0 : i64, scratch_operands = 3 : i64, tpu.core_type = #tpu.core_type<tc>, window_params = [{transform_indices = @transform_0, window_bounds = array<i64: 1, 16, 48>}, {pipeline_mode = #tpu.pipeline_mode<synchronous>, transform_indices = @transform_1, window_bounds = array<i64: 3, 48, 224>}, {pipeline_mode = #tpu.pipeline_mode<synchronous>, transform_indices = @transform_2, window_bounds = array<i64: 1, 224>}, {pipeline_mode = #tpu.pipeline_mode<synchronous>, transform_indices = @transform_3, window_bounds = array<i64: 1, 224>}, {pipeline_mode = #tpu.pipeline_mode<synchronous>, transform_indices = @transform_4, window_bounds = array<i64: 3, 224, 96>}, {pipeline_mode = #tpu.pipeline_mode<synchronous>, transform_indices = @transform_5, window_bounds = array<i64: 3, 224, 96>}, {pipeline_mode = #tpu.pipeline_mode<synchronous>, transform_indices = @transform_6, window_bounds = array<i64: 1, 96>}, {pipeline_mode = #tpu.pipeline_mode<synchronous>, transform_indices = @transform_7, window_bounds = array<i64: 1, 96>}, {pipeline_mode = #tpu.pipeline_mode<synchronous>, transform_indices = @transform_8, window_bounds = array<i64: 6, 96, 512>}, {pipeline_mode = #tpu.pipeline_mode<synchronous>, transform_indices = @transform_9, window_bounds = array<i64: 1, 512>}, {pipeline_mode = #tpu.pipeline_mode<synchronous>, transform_indices = @transform_10, window_bounds = array<i64: 512, 10>}, {pipeline_mode = #tpu.pipeline_mode<synchronous>, transform_indices = @transform_11, window_bounds = array<i64: 1, 10>}, {transform_indices = @transform_12, window_bounds = array<i64: 1, 1, 10>}]} {
    %c0 = arith.constant 0 : index
    %c0_0 = arith.constant 0 : index
    %c0_1 = arith.constant 0 : index
    %0 = vector.load %arg1[%c0, %c0_0, %c0_1] : memref<1x16x48xf32, #tpu.memory_space<vmem>>, vector<1x14x48xf32>
    %1 = vector.shape_cast %0 : vector<1x14x48xf32> to vector<14x48xf32>
    %2 = arith.truncf %1 : vector<14x48xf32> to vector<14x48xbf16>
    %c0_2 = arith.constant 0 : index
    %c0_3 = arith.constant 0 : index
    %c0_4 = arith.constant 0 : index
    %3 = vector.load %arg2[%c0_2, %c0_3, %c0_4] : memref<3x48x224xbf16, #tpu.memory_space<vmem>>, vector<1x48x224xbf16>
    %4 = vector.shape_cast %3 : vector<1x48x224xbf16> to vector<48x224xbf16>
    %cst = arith.constant dense<0.000000e+00> : vector<14x224xf32>
    %5 = tpu.matmul %2, %4, %cst {dimension_numbers = #tpu.dot_dimension_numbers<[1], [0], [0], [1], [0, 0, 1, 1], [], []>} : vector<14x48xbf16>, vector<48x224xbf16>, vector<14x224xf32> -> vector<14x224xf32>
    %c0_5 = arith.constant 0 : index
    %c1 = arith.constant 1 : index
    %c0_6 = arith.constant 0 : index
    %6 = vector.load %arg1[%c0_5, %c1, %c0_6] : memref<1x16x48xf32, #tpu.memory_space<vmem>>, vector<1x14x48xf32>
    %7 = vector.shape_cast %6 : vector<1x14x48xf32> to vector<14x48xf32>
    %8 = arith.truncf %7 : vector<14x48xf32> to vector<14x48xbf16>
    %c1_7 = arith.constant 1 : index
    %c0_8 = arith.constant 0 : index
    %c0_9 = arith.constant 0 : index
    %9 = vector.load %arg2[%c1_7, %c0_8, %c0_9] : memref<3x48x224xbf16, #tpu.memory_space<vmem>>, vector<1x48x224xbf16>
    %10 = vector.shape_cast %9 : vector<1x48x224xbf16> to vector<48x224xbf16>
    %cst_10 = arith.constant dense<0.000000e+00> : vector<14x224xf32>
    %11 = tpu.matmul %8, %10, %cst_10 {dimension_numbers = #tpu.dot_dimension_numbers<[1], [0], [0], [1], [0, 0, 1, 1], [], []>} : vector<14x48xbf16>, vector<48x224xbf16>, vector<14x224xf32> -> vector<14x224xf32>
    %12 = arith.addf %5, %11 : vector<14x224xf32>
    %c0_11 = arith.constant 0 : index
    %c2 = arith.constant 2 : index
    %c0_12 = arith.constant 0 : index
    %13 = vector.load %arg1[%c0_11, %c2, %c0_12] : memref<1x16x48xf32, #tpu.memory_space<vmem>>, vector<1x14x48xf32>
    %14 = vector.shape_cast %13 : vector<1x14x48xf32> to vector<14x48xf32>
    %15 = arith.truncf %14 : vector<14x48xf32> to vector<14x48xbf16>
    %c2_13 = arith.constant 2 : index
    %c0_14 = arith.constant 0 : index
    %c0_15 = arith.constant 0 : index
    %16 = vector.load %arg2[%c2_13, %c0_14, %c0_15] : memref<3x48x224xbf16, #tpu.memory_space<vmem>>, vector<1x48x224xbf16>
    %17 = vector.shape_cast %16 : vector<1x48x224xbf16> to vector<48x224xbf16>
    %cst_16 = arith.constant dense<0.000000e+00> : vector<14x224xf32>
    %18 = tpu.matmul %15, %17, %cst_16 {dimension_numbers = #tpu.dot_dimension_numbers<[1], [0], [0], [1], [0, 0, 1, 1], [], []>} : vector<14x48xbf16>, vector<48x224xbf16>, vector<14x224xf32> -> vector<14x224xf32>
    %19 = arith.addf %12, %18 : vector<14x224xf32>
    %c0_17 = arith.constant 0 : index
    %c0_18 = arith.constant 0 : index
    %20 = vector.load %arg3[%c0_17, %c0_18] : memref<1x224xf32, #tpu.memory_space<vmem>>, vector<1x224xf32>
    %21 = vector.broadcast %20 : vector<1x224xf32> to vector<14x224xf32>
    %22 = arith.mulf %19, %21 : vector<14x224xf32>
    %c0_19 = arith.constant 0 : index
    %c0_20 = arith.constant 0 : index
    %23 = vector.load %arg4[%c0_19, %c0_20] : memref<1x224xf32, #tpu.memory_space<vmem>>, vector<1x224xf32>
    %24 = vector.broadcast %23 : vector<1x224xf32> to vector<14x224xf32>
    %25 = arith.addf %22, %24 : vector<14x224xf32>
    %cst_21 = arith.constant 0.000000e+00 : f32
    %26 = vector.broadcast %cst_21 : f32 to vector<14x224xf32>
    %27 = arith.maximumf %25, %26 : vector<14x224xf32>
    %c0_22 = arith.constant 0 : index
    %c0_23 = arith.constant 0 : index
    %28 = vector.load %arg14[%c0_22, %c0_23] : memref<14x224xf32, #tpu.memory_space<vmem>>, vector<14x224xf32>
    tpu.vector_store %arg14[%c0_22, %c0_23], %27 {strides = array<i32>} : memref<14x224xf32, #tpu.memory_space<vmem>>, vector<14x224xf32>,
    %c0_24 = arith.constant 0 : index
    %c0_25 = arith.constant 0 : index
    %29 = vector.load %arg14[%c0_24, %c0_25] : memref<14x224xf32, #tpu.memory_space<vmem>>, vector<12x224xf32>
    %30 = arith.truncf %29 : vector<12x224xf32> to vector<12x224xbf16>
    %c0_26 = arith.constant 0 : index
    %c0_27 = arith.constant 0 : index
    %c0_28 = arith.constant 0 : index
    %31 = vector.load %arg5[%c0_26, %c0_27, %c0_28] : memref<3x224x96xbf16, #tpu.memory_space<vmem>>, vector<1x224x96xbf16>
    %32 = vector.shape_cast %31 : vector<1x224x96xbf16> to vector<224x96xbf16>
    %cst_29 = arith.constant dense<0.000000e+00> : vector<12x96xf32>
    %33 = tpu.matmul %30, %32, %cst_29 {dimension_numbers = #tpu.dot_dimension_numbers<[1], [0], [0], [1], [0, 0, 1, 1], [], []>} : vector<12x224xbf16>, vector<224x96xbf16>, vector<12x96xf32> -> vector<12x96xf32>
    %c0_30 = arith.constant 0 : index
    %c0_31 = arith.constant 0 : index
    %c0_32 = arith.constant 0 : index
    %34 = vector.load %arg6[%c0_30, %c0_31, %c0_32] : memref<3x224x96xbf16, #tpu.memory_space<vmem>>, vector<1x224x96xbf16>
    %35 = vector.shape_cast %34 : vector<1x224x96xbf16> to vector<224x96xbf16>
    %cst_33 = arith.constant dense<0.000000e+00> : vector<12x96xf32>
    %36 = tpu.matmul %30, %35, %cst_33 {dimension_numbers = #tpu.dot_dimension_numbers<[1], [0], [0], [1], [0, 0, 1, 1], [], []>} : vector<12x224xbf16>, vector<224x96xbf16>, vector<12x96xf32> -> vector<12x96xf32>
    %c1_34 = arith.constant 1 : index
    %c0_35 = arith.constant 0 : index
    %37 = vector.load %arg14[%c1_34, %c0_35] : memref<14x224xf32, #tpu.memory_space<vmem>>, vector<12x224xf32>
    %38 = arith.truncf %37 : vector<12x224xf32> to vector<12x224xbf16>
    %c1_36 = arith.constant 1 : index
    %c0_37 = arith.constant 0 : index
    %c0_38 = arith.constant 0 : index
    %39 = vector.load %arg5[%c1_36, %c0_37, %c0_38] : memref<3x224x96xbf16, #tpu.memory_space<vmem>>, vector<1x224x96xbf16>
    %40 = vector.shape_cast %39 : vector<1x224x96xbf16> to vector<224x96xbf16>
    %cst_39 = arith.constant dense<0.000000e+00> : vector<12x96xf32>
    %41 = tpu.matmul %38, %40, %cst_39 {dimension_numbers = #tpu.dot_dimension_numbers<[1], [0], [0], [1], [0, 0, 1, 1], [], []>} : vector<12x224xbf16>, vector<224x96xbf16>, vector<12x96xf32> -> vector<12x96xf32>
    %42 = arith.addf %33, %41 : vector<12x96xf32>
    %c1_40 = arith.constant 1 : index
    %c0_41 = arith.constant 0 : index
    %c0_42 = arith.constant 0 : index
    %43 = vector.load %arg6[%c1_40, %c0_41, %c0_42] : memref<3x224x96xbf16, #tpu.memory_space<vmem>>, vector<1x224x96xbf16>
    %44 = vector.shape_cast %43 : vector<1x224x96xbf16> to vector<224x96xbf16>
    %cst_43 = arith.constant dense<0.000000e+00> : vector<12x96xf32>
    %45 = tpu.matmul %38, %44, %cst_43 {dimension_numbers = #tpu.dot_dimension_numbers<[1], [0], [0], [1], [0, 0, 1, 1], [], []>} : vector<12x224xbf16>, vector<224x96xbf16>, vector<12x96xf32> -> vector<12x96xf32>
    %46 = arith.addf %36, %45 : vector<12x96xf32>
    %c2_44 = arith.constant 2 : index
    %c0_45 = arith.constant 0 : index
    %47 = vector.load %arg14[%c2_44, %c0_45] : memref<14x224xf32, #tpu.memory_space<vmem>>, vector<12x224xf32>
    %48 = arith.truncf %47 : vector<12x224xf32> to vector<12x224xbf16>
    %c2_46 = arith.constant 2 : index
    %c0_47 = arith.constant 0 : index
    %c0_48 = arith.constant 0 : index
    %49 = vector.load %arg5[%c2_46, %c0_47, %c0_48] : memref<3x224x96xbf16, #tpu.memory_space<vmem>>, vector<1x224x96xbf16>
    %50 = vector.shape_cast %49 : vector<1x224x96xbf16> to vector<224x96xbf16>
    %cst_49 = arith.constant dense<0.000000e+00> : vector<12x96xf32>
    %51 = tpu.matmul %48, %50, %cst_49 {dimension_numbers = #tpu.dot_dimension_numbers<[1], [0], [0], [1], [0, 0, 1, 1], [], []>} : vector<12x224xbf16>, vector<224x96xbf16>, vector<12x96xf32> -> vector<12x96xf32>
    %52 = arith.addf %42, %51 : vector<12x96xf32>
    %c2_50 = arith.constant 2 : index
    %c0_51 = arith.constant 0 : index
    %c0_52 = arith.constant 0 : index
    %53 = vector.load %arg6[%c2_50, %c0_51, %c0_52] : memref<3x224x96xbf16, #tpu.memory_space<vmem>>, vector<1x224x96xbf16>
    %54 = vector.shape_cast %53 : vector<1x224x96xbf16> to vector<224x96xbf16>
    %cst_53 = arith.constant dense<0.000000e+00> : vector<12x96xf32>
    %55 = tpu.matmul %48, %54, %cst_53 {dimension_numbers = #tpu.dot_dimension_numbers<[1], [0], [0], [1], [0, 0, 1, 1], [], []>} : vector<12x224xbf16>, vector<224x96xbf16>, vector<12x96xf32> -> vector<12x96xf32>
    %56 = arith.addf %46, %55 : vector<12x96xf32>
    %c0_54 = arith.constant 0 : index
    %c0_55 = arith.constant 0 : index
    %57 = vector.load %arg7[%c0_54, %c0_55] : memref<1x96xf32, #tpu.memory_space<vmem>>, vector<1x96xf32>
    %58 = vector.broadcast %57 : vector<1x96xf32> to vector<12x96xf32>
    %59 = arith.mulf %52, %58 : vector<12x96xf32>
    %c0_56 = arith.constant 0 : index
    %c0_57 = arith.constant 0 : index
    %60 = vector.load %arg8[%c0_56, %c0_57] : memref<1x96xf32, #tpu.memory_space<vmem>>, vector<1x96xf32>
    %61 = vector.broadcast %60 : vector<1x96xf32> to vector<12x96xf32>
    %62 = arith.addf %59, %61 : vector<12x96xf32>
    %cst_58 = arith.constant 0.000000e+00 : f32
    %63 = vector.broadcast %cst_58 : f32 to vector<12x96xf32>
    %64 = arith.maximumf %62, %63 : vector<12x96xf32>
    %c0_59 = arith.constant 0 : index
    %c0_60 = arith.constant 0 : index
    %65 = vector.load %arg7[%c0_59, %c0_60] : memref<1x96xf32, #tpu.memory_space<vmem>>, vector<1x96xf32>
    %66 = vector.broadcast %65 : vector<1x96xf32> to vector<12x96xf32>
    %67 = arith.mulf %56, %66 : vector<12x96xf32>
    %c0_61 = arith.constant 0 : index
    %c0_62 = arith.constant 0 : index
    %68 = vector.load %arg8[%c0_61, %c0_62] : memref<1x96xf32, #tpu.memory_space<vmem>>, vector<1x96xf32>
    %69 = vector.broadcast %68 : vector<1x96xf32> to vector<12x96xf32>
    %70 = arith.addf %67, %69 : vector<12x96xf32>
    %cst_63 = arith.constant 0.000000e+00 : f32
    %71 = vector.broadcast %cst_63 : f32 to vector<12x96xf32>
    %72 = arith.maximumf %70, %71 : vector<12x96xf32>
    %73 = arith.maximumf %64, %72 : vector<12x96xf32>
    %c0_64 = arith.constant 0 : index
    %c0_65 = arith.constant 0 : index
    %74 = vector.load %arg15[%c0_64, %c0_65] : memref<12x96xf32, #tpu.memory_space<vmem>>, vector<12x96xf32>
    tpu.vector_store %arg15[%c0_64, %c0_65], %73 {strides = array<i32>} : memref<12x96xf32, #tpu.memory_space<vmem>>, vector<12x96xf32>,
    %c0_66 = arith.constant 0 : index
    %c0_67 = arith.constant 0 : index
    %75 = tpu.strided_load %arg15[%c0_66, %c0_67] {strides = array<i32: 2, 1>} : memref<12x96xf32, #tpu.memory_space<vmem>>, vector<6x96xf32>
    %c1_68 = arith.constant 1 : index
    %c0_69 = arith.constant 0 : index
    %76 = tpu.strided_load %arg15[%c1_68, %c0_69] {strides = array<i32: 2, 1>} : memref<12x96xf32, #tpu.memory_space<vmem>>, vector<6x96xf32>
    %77 = arith.maximumf %75, %76 : vector<6x96xf32>
    %c0_70 = arith.constant 0 : index
    %c0_71 = arith.constant 0 : index
    %78 = vector.load %arg16[%c0_70, %c0_71] : memref<6x96xf32, #tpu.memory_space<vmem>>, vector<6x96xf32>
    tpu.vector_store %arg16[%c0_70, %c0_71], %77 {strides = array<i32>} : memref<6x96xf32, #tpu.memory_space<vmem>>, vector<6x96xf32>,
    %c0_72 = arith.constant 0 : index
    %c0_73 = arith.constant 0 : index
    %79 = vector.load %arg16[%c0_72, %c0_73] : memref<6x96xf32, #tpu.memory_space<vmem>>, vector<1x96xf32>
    %80 = arith.truncf %79 : vector<1x96xf32> to vector<1x96xbf16>
    %c0_74 = arith.constant 0 : index
    %c0_75 = arith.constant 0 : index
    %c0_76 = arith.constant 0 : index
    %81 = vector.load %arg9[%c0_74, %c0_75, %c0_76] : memref<6x96x512xbf16, #tpu.memory_space<vmem>>, vector<1x96x512xbf16>
    %82 = vector.shape_cast %81 : vector<1x96x512xbf16> to vector<96x512xbf16>
    %cst_77 = arith.constant dense<0.000000e+00> : vector<1x512xf32>
    %83 = tpu.matmul %80, %82, %cst_77 {dimension_numbers = #tpu.dot_dimension_numbers<[1], [0], [0], [1], [0, 0, 1, 1], [], []>} : vector<1x96xbf16>, vector<96x512xbf16>, vector<1x512xf32> -> vector<1x512xf32>
    %c1_78 = arith.constant 1 : index
    %c0_79 = arith.constant 0 : index
    %84 = vector.load %arg16[%c1_78, %c0_79] : memref<6x96xf32, #tpu.memory_space<vmem>>, vector<1x96xf32>
    %85 = arith.truncf %84 : vector<1x96xf32> to vector<1x96xbf16>
    %c1_80 = arith.constant 1 : index
    %c0_81 = arith.constant 0 : index
    %c0_82 = arith.constant 0 : index
    %86 = vector.load %arg9[%c1_80, %c0_81, %c0_82] : memref<6x96x512xbf16, #tpu.memory_space<vmem>>, vector<1x96x512xbf16>
    %87 = vector.shape_cast %86 : vector<1x96x512xbf16> to vector<96x512xbf16>
    %cst_83 = arith.constant dense<0.000000e+00> : vector<1x512xf32>
    %88 = tpu.matmul %85, %87, %cst_83 {dimension_numbers = #tpu.dot_dimension_numbers<[1], [0], [0], [1], [0, 0, 1, 1], [], []>} : vector<1x96xbf16>, vector<96x512xbf16>, vector<1x512xf32> -> vector<1x512xf32>
    %89 = arith.addf %83, %88 : vector<1x512xf32>
    %c2_84 = arith.constant 2 : index
    %c0_85 = arith.constant 0 : index
    %90 = vector.load %arg16[%c2_84, %c0_85] : memref<6x96xf32, #tpu.memory_space<vmem>>, vector<1x96xf32>
    %91 = arith.truncf %90 : vector<1x96xf32> to vector<1x96xbf16>
    %c2_86 = arith.constant 2 : index
    %c0_87 = arith.constant 0 : index
    %c0_88 = arith.constant 0 : index
    %92 = vector.load %arg9[%c2_86, %c0_87, %c0_88] : memref<6x96x512xbf16, #tpu.memory_space<vmem>>, vector<1x96x512xbf16>
    %93 = vector.shape_cast %92 : vector<1x96x512xbf16> to vector<96x512xbf16>
    %cst_89 = arith.constant dense<0.000000e+00> : vector<1x512xf32>
    %94 = tpu.matmul %91, %93, %cst_89 {dimension_numbers = #tpu.dot_dimension_numbers<[1], [0], [0], [1], [0, 0, 1, 1], [], []>} : vector<1x96xbf16>, vector<96x512xbf16>, vector<1x512xf32> -> vector<1x512xf32>
    %95 = arith.addf %89, %94 : vector<1x512xf32>
    %c3 = arith.constant 3 : index
    %c0_90 = arith.constant 0 : index
    %96 = vector.load %arg16[%c3, %c0_90] : memref<6x96xf32, #tpu.memory_space<vmem>>, vector<1x96xf32>
    %97 = arith.truncf %96 : vector<1x96xf32> to vector<1x96xbf16>
    %c3_91 = arith.constant 3 : index
    %c0_92 = arith.constant 0 : index
    %c0_93 = arith.constant 0 : index
    %98 = vector.load %arg9[%c3_91, %c0_92, %c0_93] : memref<6x96x512xbf16, #tpu.memory_space<vmem>>, vector<1x96x512xbf16>
    %99 = vector.shape_cast %98 : vector<1x96x512xbf16> to vector<96x512xbf16>
    %cst_94 = arith.constant dense<0.000000e+00> : vector<1x512xf32>
    %100 = tpu.matmul %97, %99, %cst_94 {dimension_numbers = #tpu.dot_dimension_numbers<[1], [0], [0], [1], [0, 0, 1, 1], [], []>} : vector<1x96xbf16>, vector<96x512xbf16>, vector<1x512xf32> -> vector<1x512xf32>
    %101 = arith.addf %95, %100 : vector<1x512xf32>
    %c4 = arith.constant 4 : index
    %c0_95 = arith.constant 0 : index
    %102 = vector.load %arg16[%c4, %c0_95] : memref<6x96xf32, #tpu.memory_space<vmem>>, vector<1x96xf32>
    %103 = arith.truncf %102 : vector<1x96xf32> to vector<1x96xbf16>
    %c4_96 = arith.constant 4 : index
    %c0_97 = arith.constant 0 : index
    %c0_98 = arith.constant 0 : index
    %104 = vector.load %arg9[%c4_96, %c0_97, %c0_98] : memref<6x96x512xbf16, #tpu.memory_space<vmem>>, vector<1x96x512xbf16>
    %105 = vector.shape_cast %104 : vector<1x96x512xbf16> to vector<96x512xbf16>
    %cst_99 = arith.constant dense<0.000000e+00> : vector<1x512xf32>
    %106 = tpu.matmul %103, %105, %cst_99 {dimension_numbers = #tpu.dot_dimension_numbers<[1], [0], [0], [1], [0, 0, 1, 1], [], []>} : vector<1x96xbf16>, vector<96x512xbf16>, vector<1x512xf32> -> vector<1x512xf32>
    %107 = arith.addf %101, %106 : vector<1x512xf32>
    %c5 = arith.constant 5 : index
    %c0_100 = arith.constant 0 : index
    %108 = vector.load %arg16[%c5, %c0_100] : memref<6x96xf32, #tpu.memory_space<vmem>>, vector<1x96xf32>
    %109 = arith.truncf %108 : vector<1x96xf32> to vector<1x96xbf16>
    %c5_101 = arith.constant 5 : index
    %c0_102 = arith.constant 0 : index
    %c0_103 = arith.constant 0 : index
    %110 = vector.load %arg9[%c5_101, %c0_102, %c0_103] : memref<6x96x512xbf16, #tpu.memory_space<vmem>>, vector<1x96x512xbf16>
    %111 = vector.shape_cast %110 : vector<1x96x512xbf16> to vector<96x512xbf16>
    %cst_104 = arith.constant dense<0.000000e+00> : vector<1x512xf32>
    %112 = tpu.matmul %109, %111, %cst_104 {dimension_numbers = #tpu.dot_dimension_numbers<[1], [0], [0], [1], [0, 0, 1, 1], [], []>} : vector<1x96xbf16>, vector<96x512xbf16>, vector<1x512xf32> -> vector<1x512xf32>
    %113 = arith.addf %107, %112 : vector<1x512xf32>
    %c0_105 = arith.constant 0 : index
    %c0_106 = arith.constant 0 : index
    %114 = vector.load %arg10[%c0_105, %c0_106] : memref<1x512xf32, #tpu.memory_space<vmem>>, vector<1x512xf32>
    %115 = arith.addf %113, %114 : vector<1x512xf32>
    %cst_107 = arith.constant 0.000000e+00 : f32
    %116 = vector.broadcast %cst_107 : f32 to vector<1x512xf32>
    %117 = arith.maximumf %115, %116 : vector<1x512xf32>
    %118 = arith.truncf %117 : vector<1x512xf32> to vector<1x512xbf16>
    %c0_108 = arith.constant 0 : index
    %c0_109 = arith.constant 0 : index
    %119 = vector.load %arg11[%c0_108, %c0_109] : memref<512x10xbf16, #tpu.memory_space<vmem>>, vector<512x10xbf16>
    %cst_110 = arith.constant dense<0.000000e+00> : vector<1x10xf32>
    %120 = tpu.matmul %118, %119, %cst_110 {dimension_numbers = #tpu.dot_dimension_numbers<[1], [0], [0], [1], [0, 0, 1, 1], [], []>} : vector<1x512xbf16>, vector<512x10xbf16>, vector<1x10xf32> -> vector<1x10xf32>
    %c0_111 = arith.constant 0 : index
    %c0_112 = arith.constant 0 : index
    %121 = vector.load %arg12[%c0_111, %c0_112] : memref<1x10xf32, #tpu.memory_space<vmem>>, vector<1x10xf32>
    %122 = arith.addf %120, %121 : vector<1x10xf32>
    %cst_113 = arith.constant dense<0xFF800000> : vector<1xf32>
    %123 = vector.multi_reduction <maximumf>, %122, %cst_113 [1] : vector<1x10xf32> to vector<1xf32>
    %124 = vector.shape_cast %123 : vector<1xf32> to vector<1x1xf32>
    %125 = vector.broadcast %124 : vector<1x1xf32> to vector<1x10xf32>
    %126 = arith.subf %122, %125 : vector<1x10xf32>
    %127 = math.exp %126 : vector<1x10xf32>
    %cst_114 = arith.constant dense<0.000000e+00> : vector<1xf32>
    %128 = vector.multi_reduction <add>, %127, %cst_114 [1] : vector<1x10xf32> to vector<1xf32>
    %129 = vector.shape_cast %128 : vector<1xf32> to vector<1x1xf32>
    %130 = tpu.reciprocal %129 {approx = true} : vector<1x1xf32> -> vector<1x1xf32>
    %131 = vector.broadcast %130 : vector<1x1xf32> to vector<1x10xf32>
    %132 = arith.mulf %127, %131 : vector<1x10xf32>
    %c0_115 = arith.constant 0 : index
    %c0_116 = arith.constant 0 : index
    %c0_117 = arith.constant 0 : index
    %133 = vector.load %arg13[%c0_115, %c0_116, %c0_117] : memref<1x1x10xf32, #tpu.memory_space<vmem>>, vector<1x1x10xf32>
    %134 = vector.shape_cast %133 : vector<1x1x10xf32> to vector<1x10xf32>
    %135 = vector.shape_cast %132 : vector<1x10xf32> to vector<1x1x10xf32>
    tpu.vector_store %arg13[%c0_115, %c0_116, %c0_117], %135 {strides = array<i32>} : memref<1x1x10xf32, #tpu.memory_space<vmem>>, vector<1x1x10xf32>,
    return
  }
  func.func @transform_0(%arg0: i32) -> (i32, i32, i32) {
    %c0_i32 = arith.constant 0 : i32
    %c0_i32_0 = arith.constant 0 : i32
    %c0_i32_1 = arith.constant 0 : i32
    return %arg0, %c0_i32, %c0_i32_0 : i32, i32, i32
  }
  func.func @transform_1(%arg0: i32) -> (i32, i32, i32) {
    %c0_i32 = arith.constant 0 : i32
    %c0_i32_0 = arith.constant 0 : i32
    %c0_i32_1 = arith.constant 0 : i32
    %c0_i32_2 = arith.constant 0 : i32
    return %c0_i32, %c0_i32_0, %c0_i32_1 : i32, i32, i32
  }
  func.func @transform_2(%arg0: i32) -> (i32, i32) {
    %c0_i32 = arith.constant 0 : i32
    %c0_i32_0 = arith.constant 0 : i32
    %c0_i32_1 = arith.constant 0 : i32
    return %c0_i32, %c0_i32_0 : i32, i32
  }
  func.func @transform_3(%arg0: i32) -> (i32, i32) {
    %c0_i32 = arith.constant 0 : i32
    %c0_i32_0 = arith.constant 0 : i32
    %c0_i32_1 = arith.constant 0 : i32
    return %c0_i32, %c0_i32_0 : i32, i32
  }
  func.func @transform_4(%arg0: i32) -> (i32, i32, i32) {
    %c0_i32 = arith.constant 0 : i32
    %c0_i32_0 = arith.constant 0 : i32
    %c0_i32_1 = arith.constant 0 : i32
    %c0_i32_2 = arith.constant 0 : i32
    return %c0_i32, %c0_i32_0, %c0_i32_1 : i32, i32, i32
  }
  func.func @transform_5(%arg0: i32) -> (i32, i32, i32) {
    %c0_i32 = arith.constant 0 : i32
    %c0_i32_0 = arith.constant 0 : i32
    %c0_i32_1 = arith.constant 0 : i32
    %c0_i32_2 = arith.constant 0 : i32
    return %c0_i32, %c0_i32_0, %c0_i32_1 : i32, i32, i32
  }
  func.func @transform_6(%arg0: i32) -> (i32, i32) {
    %c0_i32 = arith.constant 0 : i32
    %c0_i32_0 = arith.constant 0 : i32
    %c0_i32_1 = arith.constant 0 : i32
    return %c0_i32, %c0_i32_0 : i32, i32
  }
  func.func @transform_7(%arg0: i32) -> (i32, i32) {
    %c0_i32 = arith.constant 0 : i32
    %c0_i32_0 = arith.constant 0 : i32
    %c0_i32_1 = arith.constant 0 : i32
    return %c0_i32, %c0_i32_0 : i32, i32
  }
  func.func @transform_8(%arg0: i32) -> (i32, i32, i32) {
    %c0_i32 = arith.constant 0 : i32
    %c0_i32_0 = arith.constant 0 : i32
    %c0_i32_1 = arith.constant 0 : i32
    %c0_i32_2 = arith.constant 0 : i32
    return %c0_i32, %c0_i32_0, %c0_i32_1 : i32, i32, i32
  }
  func.func @transform_9(%arg0: i32) -> (i32, i32) {
    %c0_i32 = arith.constant 0 : i32
    %c0_i32_0 = arith.constant 0 : i32
    %c0_i32_1 = arith.constant 0 : i32
    return %c0_i32, %c0_i32_0 : i32, i32
  }
  func.func @transform_10(%arg0: i32) -> (i32, i32) {
    %c0_i32 = arith.constant 0 : i32
    %c0_i32_0 = arith.constant 0 : i32
    %c0_i32_1 = arith.constant 0 : i32
    return %c0_i32, %c0_i32_0 : i32, i32
  }
  func.func @transform_11(%arg0: i32) -> (i32, i32) {
    %c0_i32 = arith.constant 0 : i32
    %c0_i32_0 = arith.constant 0 : i32
    %c0_i32_1 = arith.constant 0 : i32
    return %c0_i32, %c0_i32_0 : i32, i32
  }
  func.func @transform_12(%arg0: i32) -> (i32, i32, i32) {
    %c0_i32 = arith.constant 0 : i32
    %c0_i32_0 = arith.constant 0 : i32
    %c0_i32_1 = arith.constant 0 : i32
    return %arg0, %c0_i32, %c0_i32_0 : i32, i32, i32
  }
}

</mosaic_0001>

<bundles_post_ra>
// kernel: cnn_custom_forward.1
= control target key start
LH: loop header
LB: loop body
LE: loop exit
PB: predicated region body
PF: predicated region fallthrough
CT: control target
= control target key end

     0   :  { %s5840_s0 = inlined_call_operand.vmem [shape: f32[2,16,48], index: 0, kind: input, shape index: {}]   ;;  %s5841_s1 = inlined_call_operand.hbm [shape: bf16[3,48,224], index: 1, kind: input, shape index: {}]   ;;  %s5842_s2 = inlined_call_operand.vmem [shape: f32[1,224], index: 2, kind: input, shape index: {}]   ;;  %s5843_s3 = inlined_call_operand.vmem [shape: f32[1,224], index: 3, kind: input, shape index: {}]   ;;  %s5844_s4 = inlined_call_operand.vmem [shape: bf16[3,224,96], index: 4, kind: input, shape index: {}]   ;;  %s5845_s5 = inlined_call_operand.vmem [shape: bf16[3,224,96], index: 5, kind: input, shape index: {}]   ;;  %s5846_s6 = inlined_call_operand.vmem [shape: f32[1,96], index: 6, kind: input, shape index: {}]   ;;  %s5847_s7 = inlined_call_operand.vmem [shape: f32[1,96], index: 7, kind: input, shape index: {}]   ;;  %s5848_s8 = inlined_call_operand.vmem [shape: bf16[6,96,512], index: 8, kind: input, shape index: {}]   ;;  %s5849_s9 = inlined_call_operand.vmem [shape: f32[1,512], index: 9, kind: input, shape index: {}]   ;;  %s5850_s10 = inlined_call_operand.vmem [shape: bf16[512,10], index: 10, kind: input, shape index: {}]   ;;  %s5851_s11 = inlined_call_operand.vmem [shape: f32[1,10], index: 11, kind: input, shape index: {}]   ;;  %s5852_s12 = inlined_call_operand.hbm [shape: f32[2,1,10], index: 12, kind: output, shape index: {}]  }
   0x1   :  { %5853 = sst [smem:[#allocation11_spill]] %s5840_s0 }
   0x2   :  { %5854 = sst [smem:[#allocation12_spill]] %s5841_s1 }
   0x3   :  { %5855 = sst [smem:[#allocation13_spill]] %s5842_s2 }
   0x4   :  { %17 = vsyncpa [#allocation6], 0 }
   0x5   :  { %18 = vsyncpa [#allocation7], 0 }
   0x6   :  { %20 = vsyncpa [#allocation7 + $0x1], 0  ;;  %s4778_s21 = smov 0   ;;  %s4780_s22 = smov 0  }
   0x7   :  { %s4782_s23 = smov 0   ;;  %s4784_s24 = smov 0  }
   0x8 LB: > { %s4799_s25 = sadd.s32 4294967295, %s4706_s24   ;;  %s3611_s26 = sadd.s32 4294967294, %s4706_s24   ;;  %s4706_s24 = sphi %s4784_s24, %s5866_s24   ;;  %s4702_s23 = sphi %s4782_s23, %s5865_s23   ;;  %s4698_s22 = sphi %s4780_s22, %s5864_s22   ;;  %s4694_s21 = sphi %s4778_s21, %s5863_s21  }
   0x9   : > { %s4803_s27 = sadd.s32 1, %s4706_s24   ;;  %s290_s28 = sadd.s32 1, %s4702_s23 }
   0xa   : > { %s287_s29 = ssub.s32 %s4706_s24, %s4803_s27  ;;  %p300_p0 = scmp.ne.s32.totalorder %s4702_s23, %s4698_s22 }
   0xb   : > { %p288_p1 = scmp.eq.s32.totalorder %s287_s29, 0  ;;  %p301_p2 = scmp.eq.s32.totalorder %s4799_s25, 1 }
   0xc   : > { %p306_p3 = scmp.ne.s32.totalorder %s4698_s22, %s4694_s21  ;;  %p307_p4 = scmp.eq.s32.totalorder %s3611_s26, 1 }
   0xd   : > { %s4814_s30 = scalar_select %p288_p1, %s4702_s23, %s290_s28  }
   0xe   : > { %p4816_p5 = por %p301_p2, %p300_p0  ;;  %p4820_p6 = por %p307_p4, %p306_p3 }
   0xf   : > { %p3612_p7 = scmp.ge.s32.totalorder %s4706_s24, 1  ;;  %p314_p8 = scmp.lt.s32.totalorder %s4706_s24, 3 }
  0x10   : > { %s5857_s14 = scalar_select %p4820_p6, 1, 0 }
  0x11   : > { %p4214_p9 = scmp.eq.s32.totalorder %s4799_s25, 0  ;;  %p4827_p10 = pnand %p3612_p7, %p314_p8 }
  0x12   : > { %s4708_s16 = smov [#allocation5]  }
  0x13   : > { %s326_s17 = sshll.u32 %s4708_s16, 4  ;;  %p4206_p11 = pneg %p4827_p10  ;;  %s327_s17 = int_to_ptr.vmem [resolvable:$true] %s326_s17 }
  0x14   : > { %s4627_s18 = scalar_lea.vmem %s327_s17, 2304  ;;  %p4635_p3 = scmp.lt.s32.totalorder %s327_s17, %s327_s17 }
  0x15   : > { %p4207_p12 = pnand %p4214_p9, %p4206_p11  ;;  %p4628_p0 = scmp.ne.s32.totalorder %s327_s17, %s4627_s18 }
  0x16   : > { %p4636_p4 = scmp.lt.s32.totalorder %s4627_s18, %s4627_s18 }
  0x17   : > { %p4618_p13 = pneg %p4207_p12 }
  0x18   : > { %p4637_p6 = por %p4636_p4, %p4635_p3 }
  0x19   : > { %p4630_p1 = pnand %p4628_p0, %p4618_p13 }
  0x1b   : > { %p4631_p2 = pneg %p4630_p1 }
  0x1d   : > { %p4638_p7 = pnand %p4637_p6, %p4631_p2 }
  0x1f   : > { %4641 = shalt.err (!%p4638_p7)
}
  0x20   : > { %s4709_s19 = smov 128   ;;  %s4710_s20 = smov 8  }
  0x21   : > { %s5859_s1 = sld [smem:[#allocation12_spill]] }
  0x23   : > { %380 = sbr.rel (%p4827_p10) target bundleno = 1481 (0x5c9), region = 68 }
  0x27   : > { %4209 = dma.hbm_to_vmem [thread:$0]  (!%p4207_p12), %s5859_s1, 2304, %s327_s17, [#allocation6], %s4709_s19, %s4709_s19, %s4710_s20  }
  0x28   : > { %4685 = dma.done.wait (%p4214_p9), [#allocation6], 2304  }
  0x29   : > { %4687 = vsyncadd (%p4214_p9), [#allocation6], 4294964992  ;;  %v4711_v0 = vmov 0   ;;  %p421_p6 = scmp.lt.s32.totalorder %s4799_s25, 1  ;;  %v4253_v1 = vld [vmem:[#allocation5 + $0x54] ss:$8 sps:$4 sm:$0xff]   ;;  %v691_v56 = vlaneseq }
  0x2a   : > { %512 = vmatprep.mubr.bf16.mxu0 %v4711_v0  ;;  %588 = vmatprep.mubr.bf16.mxu1 %v4711_v0  ;;  %v4255_v2 = vld [vmem:[#allocation5 + $0x24] ss:$8 sps:$4 sm:$0xff]   ;;  %v4257_v3 = vld [vmem:[#allocation5 + $0x50] ss:$8 sps:$4 sm:$0xff]   ;;  %v4258_v4 = vld [vmem:[#allocation5 + $0x20] ss:$8 sps:$4 sm:$0xff]  }
  0x2b   : > { %s422_s29 = scalar_select %p421_p6, %s4799_s25, 1  ;;  %490 = vmatprep.subr.bf16.mxu0 %v4253_v1  ;;  %566 = vmatprep.subr.bf16.mxu1 %v4255_v2  ;;  %v4259_v5 = vld [vmem:[#allocation5 + $0x44] ss:$8 sps:$4 sm:$0xff]   ;;  %v4261_v6 = vld [vmem:[#allocation5 + $0x14] ss:$8 sps:$4 sm:$0xff]   ;;  %vm476_vm0 = vcmask 392192  }
  0x2c   : > { %491 = vmatpush1.bf16.msra.mxu0 %v4257_v3  ;;  %567 = vmatpush1.bf16.msra.mxu1 %v4258_v4  ;;  %v4263_v7 = vld [vmem:[#allocation5 + $0x40] ss:$8 sps:$4 sm:$0xff]   ;;  %v4264_v8 = vld [vmem:[#allocation5 + $0x10] ss:$8 sps:$4 sm:$0xff]   ;;  %s5860_s0 = sld [smem:[#allocation11_spill]]  ;;  %v4977_v60 = vshrl.u32 %v691_v56, 7 }
  0x2d   : > { %s4155_s15 = sshll.u32 %s422_s29, 4  ;;  %492 = vmatprep.subr.bf16.mxu0 %v4259_v5  ;;  %568 = vmatprep.subr.bf16.mxu1 %v4261_v6  ;;  %v4265_v9 = vld [vmem:[#allocation5 + $0x34] ss:$8 sps:$4 sm:$0xff]   ;;  %v4267_v10 = vld [vmem:[#allocation5 + $0x4] ss:$8 sps:$4 sm:$0xff]   ;;  %s5861_s2 = sld [smem:[#allocation13_spill]] }
  0x2e   : > { %v4269_v11 = vld [vmem:[#allocation5 + $0x30] ss:$8 sps:$4 sm:$0xff]   ;;  %v4270_v12 = vld [vmem:[#allocation5] ss:$8 sps:$4 sm:$0xff]   ;;  %v4273_v17 = vld [vmem:[#allocation5 + $0x84] ss:$8 sps:$4 sm:$0xff]  }
  0x2f   : > { %v4271_v20 = vld [vmem:[#allocation5 + $0x80] ss:$8 sps:$4 sm:$0xff]   ;;  %v4276_v21 = vld [vmem:[#allocation5 + $0x74] ss:$8 sps:$4 sm:$0xff]   ;;  %v4274_v22 = vld [vmem:[#allocation5 + $0x70] ss:$8 sps:$4 sm:$0xff]  }
  0x30   : > { %493 = vmatpush1.bf16.msra.mxu0 %v4263_v7  ;;  %569 = vmatpush1.bf16.msra.mxu1 %v4264_v8  ;;  %v4282_v23 = vld [vmem:[%s5844_s4 + $0xa8] sm:$0xff]   ;;  %v4279_v24 = vld [vmem:[#allocation5 + $0x64] ss:$8 sps:$4 sm:$0xff]   ;;  %v4277_v25 = vld [vmem:[#allocation5 + $0x60] ss:$8 sps:$4 sm:$0xff]   ;;  %v4980_v63 = vsub.s32 0, %v4977_v60 }
  0x31   : > { %494 = vmatprep.subr.bf16.mxu0 %v4265_v9  ;;  %570 = vmatprep.subr.bf16.mxu1 %v4267_v10  ;;  %v4284_v26 = vld [vmem:[%s5844_s4 + $0xa0] sm:$0xff]   ;;  %v4286_v29 = vld [vmem:[%s5844_s4 + $0x98] sm:$0xff]   ;;  %v4281_v32 = vld [vmem:[%s5844_s4 + $0x30] sm:$0xff]   ;;  %v4986_v2 = vsub.s32 1, %v4977_v60  ;;  %vm726_vm1 = vcmask 785408   ;;  %vm729_vm2 = vcmask 783360  }
  0x32   : > { %s4851_s18 = scalar_lea.vmem %s5860_s0, %s4155_s15  ;;  %v4280_v30 = vld [vmem:[%s5844_s4 + $0x38] sm:$0xff]   ;;  %v4283_v33 = vld [vmem:[%s5844_s4 + $0x28] sm:$0xff]   ;;  %v4285_v34 = vld [vmem:[%s5844_s4 + $0x20] sm:$0xff]   ;;  %vm1733_vm3 = vcmask 781312   ;;  %vm3518_vm4 = vcmask 73728   ;;  %s419_s0 = sand.u32 1, %s4698_s22  }
  0x33   : > { %v436_v13 = vld [vmem:[%s4851_s18 + $0x1] sm:$0xff]  ;;  %v437_v14 = vld [vmem:[%s4851_s18 + $0x9] sm:$0x3f]  ;;  %v4287_v35 = vld [vmem:[%s5844_s4 + $0x18] sm:$0xff]   ;;  %s4152_s15 = sshll.u32 %s4799_s25, 4  ;;  %s420_s16 = scalar_lea.vmem [#allocation8], %s419_s0 }
  0x34   : > { %v427_v15 = vld [vmem:[%s4851_s18] sm:$0xff]  ;;  %v428_v16 = vld [vmem:[%s4851_s18 + $0x8] sm:$0x3f]  ;;  %v438_v18 = vpack.c.bf16 %v437_v14, %v436_v13  ;;  %495 = vmatpush1.bf16.msra.mxu0 %v4269_v11  ;;  %571 = vmatpush1.bf16.msra.mxu1 %v4270_v12  ;;  %v4288_v36 = vld [vmem:[%s5844_s4 + $0x90] sm:$0xff]   ;;  %s3544_s17 = sshll.u32 %s420_s16, 4  ;;  %s3542_s1 = scalar_lea.hbm %s5852_s12, %s4152_s15  ;;  %s3545_s17 = int_to_ptr.vmem [resolvable:$true] %s3544_s17 }
  0x35   : > { %v429_v19 = vpack.c.bf16 %v428_v16, %v427_v15  ;;  %652 = vmatprep.subr.bf16.mxu0 %v4273_v17  ;;  %930 = vmatprep.subr.bf16.mxu1 %v4711_v0  ;;  %v599_v27 = vld [vmem:[%s4851_s18 + $0x2] sm:$0xff]  ;;  %v600_v28 = vld [vmem:[%s4851_s18 + $0xa] sm:$0x3f]  ;;  %v4289_v37 = vld [vmem:[%s5844_s4 + $0x10] sm:$0xff]   ;;  %s4642_s18 = scalar_lea.vmem %s3545_s17, 16  ;;  %s4712_s26 = smov [#allocation8]  }
  0x36   : > { %v601_v31 = vpack.c.bf16 %v600_v28, %v599_v27  ;;  %v4290_v38 = vld [vmem:[%s5844_s4 + $0x88] sm:$0xff]   ;;  %v4292_v40 = vld [vmem:[%s5844_s4 + $0x80] sm:$0xff]   ;;  %v4294_v42 = vld [vmem:[%s5844_s4 + $0x78] sm:$0xff]   ;;  %p4643_p8 = scmp.ne.s32.totalorder %s3545_s17, %s4642_s18  ;;  %s4646_s28 = sshll.u32 %s4712_s26, 4  ;;  %s4647_s28 = int_to_ptr.vmem [resolvable:$false] %s4646_s28 }
  0x37   : > { %3625 = vmatmul.mubr.msk.bf16.vlgmr.msra.gmra.mxu0 %vm476_vm0, %v438_v18  ;;  %3632 = vmatmul.mubr.msk.bf16.vlgmr.msra.gmra.mxu1 %vm476_vm0, %v429_v19  ;;  %v4291_v39 = vld [vmem:[%s5844_s4 + $0x8] sm:$0xff]   ;;  %v4293_v41 = vld [vmem:[%s5844_s4] sm:$0xff]   ;;  %v4296_v44 = vld [vmem:[%s5844_s4 + $0x70] sm:$0xff]   ;;  %s4648_s25 = scalar_lea.vmem %s4647_s28, 32  ;;  %p4649_p11 = scmp.lt.s32.totalorder %s3545_s17, %s4647_s28 }
  0x38   : > { %653 = vmatpush1.bf16.msra.mxu0 %v4271_v20  ;;  %674 = vmatprep.mubr.bf16.mxu0 %v4711_v0  ;;  %v4295_v43 = vld [vmem:[%s5844_s4 + $0x68] sm:$0xff]   ;;  %v4297_v45 = vld [vmem:[%s5844_s4 + $0x60] sm:$0xff]   ;;  %v4298_v46 = vld [vmem:[%s5844_s4 + $0xd8] sm:$0xff]   ;;  %p4644_p9 = pnand %p4643_p8, %p4816_p5  ;;  %p4650_p12 = scmp.lt.s32.totalorder %s4648_s25, %s4642_s18 }
  0x39   : > { %654 = vmatprep.subr.bf16.mxu0 %v4276_v21  ;;  %931 = vmatpush1.bf16.msra.mxu1 %v4282_v23  ;;  %v4299_v47 = vld [vmem:[%s5844_s4 + $0x58] sm:$0xff]   ;;  %v4300_v48 = vld [vmem:[%s5844_s4 + $0xd0] sm:$0xff]   ;;  %v4302_v50 = vld [vmem:[%s5844_s4 + $0xc8] sm:$0xff]  }
  0x3a   : > { %932 = vmatprep.subr.bf16.mxu1 %v4711_v0  ;;  %v4301_v49 = vld [vmem:[%s5844_s4 + $0x50] sm:$0xff]   ;;  %v4303_v51 = vld [vmem:[%s5844_s4 + $0x48] sm:$0xff]   ;;  %v4304_v52 = vld [vmem:[%s5844_s4 + $0xc0] sm:$0xff]   ;;  %p4645_p10 = pneg %p4644_p9  ;;  %p4651_p13 = por %p4650_p12, %p4649_p11 }
  0x3b   : > { %v4305_v53 = vld [vmem:[%s5844_s4 + $0x40] sm:$0xff]   ;;  %v4306_v54 = vld [vmem:[%s5844_s4 + $0xb8] sm:$0xff]   ;;  %v4308_v55 = vld [vmem:[%s5844_s4 + $0xb0] sm:$0xff]  }
  0x3c   : > { %655 = vmatpush1.bf16.msra.mxu0 %v4274_v22  ;;  %v689_v1 = vld [vmem:[%s5861_s2] sm:$0x3]  ;;  %s3532_s2 = scalar_lea.sflag [#allocation7], %s419_s0  ;;  %p4652_p0 = pnand %p4651_p13, %p4645_p10 }
  0x3d   : > { %656 = vmatprep.subr.bf16.mxu0 %v4279_v24  ;;  %933 = vmatpush1.bf16.msra.mxu1 %v4284_v26  ;;  %v705_v5 = vld [vmem:[%s5843_s3] sm:$0x3]  ;;  %v694_v7 = vrot.slane %v689_v1, %v4980_v63  ;;  %v698_v12 = vrot.slane %v689_v1, %v4986_v2  ;;  %v4316_v1 = vld [vmem:[%s5845_s5 + $0x90] sm:$0xff]  }
  0x3e   : > { %934 = vmatprep.subr.bf16.mxu1 %v4711_v0  ;;  %v710_v11 = vrot.slane %v705_v5, %v4980_v63  ;;  %v714_v18 = vrot.slane %v705_v5, %v4986_v2  ;;  %v4319_v5 = vld [vmem:[%s5845_s5 + $0x8] sm:$0xff]  }
  0x40   : > { %657 = vmatpush1.bf16.msra.mxu0 %v4277_v25 }
  0x41   : > { %1058 = vmatprep.subr.bf16.mxu0 %v4711_v0  ;;  %935 = vmatpush1.bf16.msra.mxu1 %v4286_v29 }
  0x42   : > { %936 = vmatprep.subr.bf16.mxu1 %v4711_v0 }
  0x43   : > { %3639 = vmatmul.mubr.msk.bf16.vlgmr.msra.gmra.mxu0 %vm476_vm0, %v601_v31 }
  0x44   : > { %1059 = vmatpush1.bf16.msra.mxu0 %v4280_v30 }
  0x45   : > { %1060 = vmatprep.subr.bf16.mxu0 %v4711_v0  ;;  %937 = vmatpush1.bf16.msra.mxu1 %v4288_v36 }
  0x46   : > { %938 = vmatprep.subr.bf16.mxu1 %v4711_v0 }
  0x48   : > { %1061 = vmatpush1.bf16.msra.mxu0 %v4281_v32 }
  0x49   : > { %1062 = vmatprep.subr.bf16.mxu0 %v4711_v0  ;;  %939 = vmatpush1.bf16.msra.mxu1 %v4290_v38 }
  0x4a   : > { %940 = vmatprep.subr.bf16.mxu1 %v4711_v0 }
  0x4c   : > { %1063 = vmatpush1.bf16.msra.mxu0 %v4283_v33 }
  0x4d   : > { %1064 = vmatprep.subr.bf16.mxu0 %v4711_v0  ;;  %941 = vmatpush1.bf16.msra.mxu1 %v4292_v40 }
  0x4e   : > { %942 = vmatprep.subr.bf16.mxu1 %v4711_v0 }
  0x50   : > { %1065 = vmatpush1.bf16.msra.mxu0 %v4285_v34 }
  0x51   : > { %1066 = vmatprep.subr.bf16.mxu0 %v4711_v0  ;;  %943 = vmatpush1.bf16.msra.mxu1 %v4294_v42 }
  0x52   : > { %944 = vmatprep.subr.bf16.mxu1 %v4711_v0 }
  0x54   : > { %1067 = vmatpush1.bf16.msra.mxu0 %v4287_v35 }
  0x55   : > { %1068 = vmatprep.subr.bf16.mxu0 %v4711_v0  ;;  %945 = vmatpush1.bf16.msra.mxu1 %v4296_v44  ;;  %v4307_v44 = vld [vmem:[%s5845_s5 + $0x38] sm:$0xff]  }
  0x56   : > { %950 = vmatprep.subr.bf16.mxu1 %v4711_v0 }
  0x58   : > { %1069 = vmatpush1.bf16.msra.mxu0 %v4289_v37 }
  0x59   : > { %1070 = vmatprep.subr.bf16.mxu0 %v4711_v0  ;;  %951 = vmatpush2.bf16.msra.mxu1 %v4298_v46 }
  0x5a   : > { %952 = vmatprep.subr.bf16.mxu1 %v4711_v0 }
  0x5c   : > { %1071 = vmatpush1.bf16.msra.mxu0 %v4291_v39 }
  0x5d   : > { %1072 = vmatprep.subr.bf16.mxu0 %v4711_v0  ;;  %953 = vmatpush2.bf16.msra.mxu1 %v4300_v48 }
  0x5e   : > { %954 = vmatprep.subr.bf16.mxu1 %v4711_v0 }
  0x60   : > { %1073 = vmatpush1.bf16.msra.mxu0 %v4293_v41 }
  0x61   : > { %1078 = vmatprep.subr.bf16.mxu0 %v4711_v0  ;;  %955 = vmatpush2.bf16.msra.mxu1 %v4302_v50  ;;  %v4309_v50 = vld [vmem:[%s5845_s5 + $0x30] sm:$0xff]  }
  0x62   : > { %956 = vmatprep.subr.bf16.mxu1 %v4711_v0 }
  0x64   : > { %1079 = vmatpush2.bf16.msra.mxu0 %v4295_v43 }
  0x65   : > { %1080 = vmatprep.subr.bf16.mxu0 %v4711_v0  ;;  %957 = vmatpush2.bf16.msra.mxu1 %v4304_v52 }
  0x66   : > { %958 = vmatprep.subr.bf16.mxu1 %v4711_v0 }
  0x68   : > { %1081 = vmatpush2.bf16.msra.mxu0 %v4297_v45 }
  0x69   : > { %1082 = vmatprep.subr.bf16.mxu0 %v4711_v0  ;;  %959 = vmatpush2.bf16.msra.mxu1 %v4306_v54 }
  0x6a   : > { %960 = vmatprep.subr.bf16.mxu1 %v4711_v0 }
  0x6c   : > { %1083 = vmatpush2.bf16.msra.mxu0 %v4299_v47 }
  0x6d   : > { %1084 = vmatprep.subr.bf16.mxu0 %v4711_v0  ;;  %961 = vmatpush2.bf16.msra.mxu1 %v4308_v55  ;;  %v4310_v55 = vld [vmem:[%s5845_s5 + $0xa8] sm:$0xff]  }
  0x6e   : > { %1212 = vmatprep.subr.bf16.mxu1 %v4711_v0 }
  0x70   : > { %1085 = vmatpush2.bf16.msra.mxu0 %v4301_v49 }
  0x71   : > { %1086 = vmatprep.subr.bf16.mxu0 %v4711_v0 }
  0x74   : > { %1087 = vmatpush2.bf16.msra.mxu0 %v4303_v51 }
  0x75   : > { %1088 = vmatprep.subr.bf16.mxu0 %v4711_v0 }
  0x78   : > { %1089 = vmatpush2.bf16.msra.mxu0 %v4305_v53 }
  0x79   : > { %1337 = vmatprep.subr.bf16.mxu0 %v4711_v0 }
  0xf7   : > { %v514_v57 = vpop.f32.mrf.mxu0  ;;  %v590_v58 = vpop.f32.mrf.mxu1 }
  0xf8   : > { %v591_v6 = vadd.f32 %v590_v58, %v514_v57  ;;  %v4311_v57 = vld [vmem:[%s5845_s5 + $0x28] sm:$0xff]   ;;  %v4312_v58 = vld [vmem:[%s5845_s5 + $0xa0] sm:$0xff]  }
  0xf9   : > { %v516_v59 = vpop.f32.mrf.mxu0  ;;  %v592_v61 = vpop.f32.mrf.mxu1 }
  0xfa   : > { %v593_v9 = vadd.f32 %v592_v61, %v516_v59  ;;  %v4313_v59 = vld [vmem:[%s5845_s5 + $0x20] sm:$0xff]   ;;  %v4314_v61 = vld [vmem:[%s5845_s5 + $0x98] sm:$0xff]  }
  0xfb   : > { %v518_v62 = vpop.f32.mrf.mxu0  ;;  %v594_v3 = vpop.f32.mrf.mxu1 }
  0xfc   : > { %v595_v15 = vadd.f32 %v594_v3, %v518_v62  ;;  %v4315_v62 = vld [vmem:[%s5845_s5 + $0x18] sm:$0xff]   ;;  %v4317_v3 = vld [vmem:[%s5845_s5 + $0x10] sm:$0xff]  }
  0xfd   : > { %v520_v4 = vpop.f32.mrf.mxu0  ;;  %v596_v13 = vpop.f32.mrf.mxu1 }
  0xfe   : > { %v597_v20 = vadd.f32 %v596_v13, %v520_v4  ;;  %v4318_v4 = vld [vmem:[%s5845_s5 + $0x88] sm:$0xff]   ;;  %v4327_v13 = vld [vmem:[%s5845_s5 + $0x58] sm:$0xff]  }
 0x103   : > { %v676_v8 = vpop.f32.mrf.mxu0 }
 0x104   : > { %v685_v10 = vadd.f32 %v676_v8, %v591_v6  ;;  %v4320_v6 = vld [vmem:[%s5845_s5 + $0x80] sm:$0xff]   ;;  %v4322_v8 = vld [vmem:[%s5845_s5 + $0x78] sm:$0xff]  }
 0x105   : > { %v678_v14 = vpop.f32.mrf.mxu0 }
 0x106   : > { %v701_v16 = vmul.f32 %v694_v7, %v685_v10  ;;  %v686_v17 = vadd.f32 %v678_v14, %v593_v9  ;;  %v4323_v9 = vld [vmem:[%s5845_s5 + $0x68] sm:$0xff]   ;;  %v4324_v10 = vld [vmem:[%s5845_s5 + $0x70] sm:$0xff]  }
 0x107   : > { %v680_v19 = vpop.f32.mrf.mxu0  ;;  %v4328_v14 = vld [vmem:[%s5845_s5 + $0xd0] sm:$0xff]  }
 0x108   : > { %v717_v21 = vadd.f32 %v710_v11, %v701_v16  ;;  %v702_v22 = vmul.f32 %v698_v12, %v686_v17  ;;  %v687_v23 = vadd.f32 %v680_v19, %v595_v15  ;;  %v4329_v15 = vld [vmem:[%s5845_s5 + $0x50] sm:$0xff]   ;;  %v4330_v16 = vld [vmem:[%s5845_s5 + $0xc8] sm:$0xff]  }
 0x109   : > { %v682_v24 = vpop.f32.mrf.mxu0  ;;  %v4331_v17 = vld [vmem:[%s5845_s5 + $0x48] sm:$0xff]  }
 0x10a   : > { %v721_v25 = vmax.f32 %v717_v21, 0.0  ;;  %v718_v26 = vadd.f32 %v714_v18, %v702_v22  ;;  %v703_v27 = vmul.f32 %v694_v7, %v687_v23  ;;  %v688_v28 = vadd.f32 %v682_v24, %v597_v20  ;;  %v4321_v7 = vld [vmem:[%s5845_s5] sm:$0xff]   ;;  %v4334_v22 = vld [vmem:[%s5845_s5 + $0xb8] sm:$0xff]  }
 0x10b   : > { %v4333_v20 = vld [vmem:[%s5845_s5 + $0x40] sm:$0xff]   ;;  %v4335_v24 = vld [vmem:[%s5845_s5 + $0x118] sm:$0xff]  }
 0x10c   : > { %725 = vst [vmem:[#allocation2] sm:$0xff] %v721_v25  ;;  %v722_v29 = vmax.f32 %v718_v26, 0.0  ;;  %v719_v30 = vadd.f32 %v710_v11, %v703_v27  ;;  %v704_v31 = vmul.f32 %v698_v12, %v688_v28  ;;  %v4325_v11 = vld [vmem:[%s5845_s5 + $0x60] sm:$0xff]   ;;  %v4326_v12 = vld [vmem:[%s5845_s5 + $0xd8] sm:$0xff]   ;;  %v4336_v26 = vld [vmem:[%s5845_s5 + $0xb0] sm:$0xff]  }
 0x10d   : > { %v4337_v27 = vld [vmem:[%s5845_s5 + $0x110] sm:$0xff]   ;;  %v4338_v28 = vld [vmem:[%s5844_s4 + $0x118] sm:$0xff]  }
 0x10e   : > { %727 = vst.msk [vmem:[#allocation2 + $0x8] sm:$0xff] %vm726_vm1, %v722_v29  ;;  %v723_v32 = vmax.f32 %v719_v30, 0.0  ;;  %v720_v33 = vadd.f32 %v714_v18, %v704_v31  ;;  %v4332_v18 = vld [vmem:[%s5845_s5 + $0xc0] sm:$0xff]   ;;  %v4339_v29 = vld [vmem:[%s5845_s5 + $0x108] sm:$0xff]   ;;  %v4340_v30 = vld [vmem:[%s5844_s4 + $0x110] sm:$0xff]  }
 0x10f   : > { %v4341_v31 = vld [vmem:[%s5845_s5 + $0x100] sm:$0xff]  }
 0x110   : > { %728 = vst [vmem:[#allocation2 + $0x10] sm:$0x3f] %v723_v32  ;;  %v724_v34 = vmax.f32 %v720_v33, 0.0  ;;  %v4342_v32 = vld [vmem:[%s5844_s4 + $0x108] sm:$0xff]   ;;  %v4343_v33 = vld [vmem:[%s5845_s5 + $0xf8] sm:$0xff]  }
 0x112   : > { %730 = vst.msk [vmem:[#allocation2 + $0x18] sm:$0x3f] %vm729_vm2, %v724_v34  ;;  %v4344_v34 = vld [vmem:[%s5844_s4 + $0x100] sm:$0xff]  }
 0x113   : > { %v793_v35 = vld [vmem:[#allocation2] sm:$0xfe] }
 0x115   : > { %v732_v37 = vld [vmem:[#allocation2 + $0x8] sm:$0xff] }
 0x116   : > { %v794_v41 = vld [vmem:[#allocation2 + $0x8] sm:$0xfe] }
 0x117   : > { %v795_v36 = vld [vmem:[#allocation2 + $0x10] sm:$0x1f]  ;;  %v1379_v21 = vld [vmem:[#allocation2 + $0x8] sm:$0xfc] }
 0x118   : > { %v733_v38 = vld [vmem:[#allocation2 + $0x10] sm:$0xf]  ;;  %v797_v39 = vpack.c.bf16 %v795_v36, %v793_v35  ;;  %v4346_v36 = vld [vmem:[%s5844_s4 + $0xf8] sm:$0xff]  }
 0x119   : > { %v734_v40 = vld [vmem:[#allocation2 + $0x18] sm:$0xf]  ;;  %v5000_v47 = vpack.c.bf16 %v733_v38, %v721_v25  ;;  %v4345_v35 = vld [vmem:[%s5845_s5 + $0xf0] sm:$0xff]  }
 0x11a   : > { %v796_v42 = vld [vmem:[#allocation2 + $0x18] sm:$0x1f]  ;;  %v736_v43 = vpack.c.bf16 %v734_v40, %v732_v37  ;;  %v831_v46 = vshll.u32 %v797_v39, 16  ;;  %v829_v53 = vshrl.u32 %v797_v39, 16  ;;  %v4347_v37 = vld [vmem:[%s5845_s5 + $0xe8] sm:$0xff]   ;;  %v4348_v38 = vld [vmem:[%s5844_s4 + $0xf0] sm:$0xff]  }
 0x11b   : > { %v798_v45 = vpack.c.bf16 %v796_v42, %v794_v41  ;;  %v1381_v19 = vld [vmem:[#allocation2 + $0x18] sm:$0x3f]  ;;  %v4349_v39 = vld [vmem:[%s5845_s5 + $0xe0] sm:$0xff]   ;;  %v4350_v40 = vld [vmem:[%s5844_s4 + $0xe8] sm:$0xff]  }
 0x11c   : > { %3697 = vmatprep.mubr.msk.bf16.mxu0 %vm726_vm1, %v736_v43  ;;  %v833_v49 = vrot.slane %v831_v46, 1  ;;  %v1383_v23 = vpack.c.bf16 %v1381_v19, %v1379_v21  ;;  %v4351_v41 = vld [vmem:[%s5845_s5 + $0x148] sm:$0xff]   ;;  %v4352_v42 = vld [vmem:[%s5844_s4 + $0xe0] sm:$0xff]  }
 0x11d   : > { %v838_v48 = vshll.u32 %v798_v45, 16  ;;  %1091 = vmatmul.mubr.bf16.vlgmr.msra.gmra.mxu0 %v5000_v47  ;;  %v836_v51 = vshrl.u32 %v798_v45, 16  ;;  %v4355_v45 = vld [vmem:[%s5845_s5 + $0x138] sm:$0xff]   ;;  %v4356_v46 = vld [vmem:[%s5844_s4 + $0x140] sm:$0xff]  }
 0x11e   : > { %1338 = vmatpush1.bf16.msra.mxu0 %v4307_v44  ;;  %3755 = vmatprep.mubr.msk.bf16.mxu0 %vm726_vm1, %v736_v43  ;;  %v5012_v56 = vor.u32 %v833_v49, %v829_v53  ;;  %v1416_v25 = vrot.slane %v1383_v23, 1  ;;  %v4353_v43 = vld [vmem:[%s5845_s5 + $0x140] sm:$0xff]   ;;  %v4354_v44 = vld [vmem:[%s5844_s4 + $0x148] sm:$0xff]  }
 0x11f   : > { %v840_v52 = vrot.slane %v838_v48, 1  ;;  %1339 = vmatprep.subr.bf16.mxu0 %v4711_v0  ;;  %v4358_v48 = vld [vmem:[%s5844_s4 + $0x138] sm:$0xff]   ;;  %v4359_v49 = vld [vmem:[%s5845_s5 + $0x128] sm:$0xff]   ;;  %v1378_v53 = vld [vmem:[#allocation2] sm:$0xfc] }
 0x120   : > { %v4387_v19 = vld [vmem:[%s5848_s8 + $0x10c] ss:$16 sps:$4 sm:$0xff]   ;;  %v4382_v21 = vld [vmem:[%s5848_s8 + $0x100] ss:$16 sps:$4 sm:$0xff]  }
 0x121   : > { %v841_v54 = vor.u32 %v840_v52, %v836_v51  ;;  %v1380_v51 = vld [vmem:[#allocation2 + $0x10] sm:$0x3f]  ;;  %v4361_v52 = vld [vmem:[%s5845_s5 + $0x120] sm:$0xff]  }
 0x122   : > { %1340 = vmatpush1.bf16.msra.mxu0 %v4309_v50  ;;  %v4360_v50 = vld [vmem:[%s5844_s4 + $0x130] sm:$0xff]  }
 0x123   : > { %3682 = vmatprep.mubr.msk.bf16.mxu1 %vm726_vm1, %v841_v54  ;;  %1341 = vmatprep.subr.bf16.mxu0 %v4711_v0 }
 0x124   : > { %963 = vmatmul.mubr.bf16.vlgmr.msra.gmra.mxu1 %v5012_v56 }
 0x125   : > { %1213 = vmatpush1.bf16.msra.mxu1 %v4310_v55  ;;  %3740 = vmatprep.mubr.msk.bf16.mxu1 %vm726_vm1, %v841_v54  ;;  %v1382_v54 = vpack.c.bf16 %v1380_v51, %v1378_v53  ;;  %v4362_v55 = vld [vmem:[%s5844_s4 + $0x128] sm:$0xff]   ;;  %v3843_v51 = vld [vmem:[%s5847_s7] ss:$0 sm:$0xff] }
 0x126   : > { %1214 = vmatprep.subr.bf16.mxu1 %v4711_v0  ;;  %1342 = vmatpush1.bf16.msra.mxu0 %v4311_v57  ;;  %v4363_v57 = vld [vmem:[%s5844_s4 + $0x120] sm:$0xff]  }
 0x127   : > { %1343 = vmatprep.subr.bf16.mxu0 %v4711_v0 }
 0x129   : > { %1215 = vmatpush1.bf16.msra.mxu1 %v4312_v58  ;;  %v4366_v58 = vld [vmem:[%s5848_s8 + $0x164] ss:$16 sps:$4 sm:$0xff]  }
 0x12a   : > { %1216 = vmatprep.subr.bf16.mxu1 %v4711_v0  ;;  %1344 = vmatpush1.bf16.msra.mxu0 %v4313_v59  ;;  %v4369_v59 = vld [vmem:[%s5848_s8 + $0x16c] ss:$16 sps:$4 sm:$0xff]  }
 0x12b   : > { %1345 = vmatprep.subr.bf16.mxu0 %v4711_v0 }
 0x12d   : > { %1217 = vmatpush1.bf16.msra.mxu1 %v4314_v61  ;;  %v4364_v61 = vld [vmem:[%s5848_s8 + $0x160] ss:$16 sps:$4 sm:$0xff]  }
 0x12e   : > { %1218 = vmatprep.subr.bf16.mxu1 %v4711_v0  ;;  %1346 = vmatpush1.bf16.msra.mxu0 %v4315_v62  ;;  %v4367_v62 = vld [vmem:[%s5848_s8 + $0x168] ss:$16 sps:$4 sm:$0xff]  }
 0x12f   : > { %1347 = vmatprep.subr.bf16.mxu0 %v4711_v0 }
 0x131   : > { %1219 = vmatpush1.bf16.msra.mxu1 %v4316_v1 }
 0x132   : > { %1220 = vmatprep.subr.bf16.mxu1 %v4711_v0  ;;  %1348 = vmatpush1.bf16.msra.mxu0 %v4317_v3 }
 0x133   : > { %1349 = vmatprep.subr.bf16.mxu0 %v4711_v0 }
 0x135   : > { %1221 = vmatpush1.bf16.msra.mxu1 %v4318_v4  ;;  %v4372_v4 = vld [vmem:[%s5848_s8 + $0x144] ss:$16 sps:$4 sm:$0xff]  }
 0x136   : > { %1222 = vmatprep.subr.bf16.mxu1 %v4711_v0  ;;  %1350 = vmatpush1.bf16.msra.mxu0 %v4319_v5  ;;  %v4375_v5 = vld [vmem:[%s5848_s8 + $0x14c] ss:$16 sps:$4 sm:$0xff]  }
 0x137   : > { %1351 = vmatprep.subr.bf16.mxu0 %v4711_v0 }
 0x139   : > { %1223 = vmatpush1.bf16.msra.mxu1 %v4320_v6  ;;  %v4370_v6 = vld [vmem:[%s5848_s8 + $0x140] ss:$16 sps:$4 sm:$0xff]  }
 0x13a   : > { %1224 = vmatprep.subr.bf16.mxu1 %v4711_v0  ;;  %1352 = vmatpush1.bf16.msra.mxu0 %v4321_v7  ;;  %v4373_v7 = vld [vmem:[%s5848_s8 + $0x148] ss:$16 sps:$4 sm:$0xff]  }
 0x13b   : > { %1357 = vmatprep.subr.bf16.mxu0 %v4711_v0 }
 0x13d   : > { %1225 = vmatpush1.bf16.msra.mxu1 %v4322_v8 }
 0x13e   : > { %1226 = vmatprep.subr.bf16.mxu1 %v4711_v0  ;;  %1358 = vmatpush2.bf16.msra.mxu0 %v4323_v9 }
 0x13f   : > { %1359 = vmatprep.subr.bf16.mxu0 %v4711_v0 }
 0x141   : > { %1227 = vmatpush1.bf16.msra.mxu1 %v4324_v10 }
 0x142   : > { %1232 = vmatprep.subr.bf16.mxu1 %v4711_v0  ;;  %1360 = vmatpush2.bf16.msra.mxu0 %v4325_v11  ;;  %v4378_v11 = vld [vmem:[%s5848_s8 + $0x124] ss:$16 sps:$4 sm:$0xff]  }
 0x143   : > { %1361 = vmatprep.subr.bf16.mxu0 %v4711_v0 }
 0x145   : > { %1233 = vmatpush2.bf16.msra.mxu1 %v4326_v12  ;;  %v4381_v12 = vld [vmem:[%s5848_s8 + $0x12c] ss:$16 sps:$4 sm:$0xff]  }
 0x146   : > { %1234 = vmatprep.subr.bf16.mxu1 %v4711_v0  ;;  %1362 = vmatpush2.bf16.msra.mxu0 %v4327_v13 }
 0x147   : > { %1363 = vmatprep.subr.bf16.mxu0 %v4711_v0 }
 0x149   : > { %1235 = vmatpush2.bf16.msra.mxu1 %v4328_v14  ;;  %v4376_v14 = vld [vmem:[%s5848_s8 + $0x120] ss:$16 sps:$4 sm:$0xff]  }
 0x14a   : > { %1236 = vmatprep.subr.bf16.mxu1 %v4711_v0  ;;  %1364 = vmatpush2.bf16.msra.mxu0 %v4329_v15  ;;  %v4379_v15 = vld [vmem:[%s5848_s8 + $0x128] ss:$16 sps:$4 sm:$0xff]  }
 0x14b   : > { %1365 = vmatprep.subr.bf16.mxu0 %v4711_v0 }
 0x14d   : > { %1237 = vmatpush2.bf16.msra.mxu1 %v4330_v16 }
 0x14e   : > { %1238 = vmatprep.subr.bf16.mxu1 %v4711_v0  ;;  %1366 = vmatpush2.bf16.msra.mxu0 %v4331_v17 }
 0x14f   : > { %1367 = vmatprep.subr.bf16.mxu0 %v4711_v0 }
 0x151   : > { %1239 = vmatpush2.bf16.msra.mxu1 %v4332_v18  ;;  %v4384_v18 = vld [vmem:[%s5848_s8 + $0x104] ss:$16 sps:$4 sm:$0xff]  }
 0x152   : > { %1240 = vmatprep.subr.bf16.mxu1 %v4711_v0  ;;  %1368 = vmatpush2.bf16.msra.mxu0 %v4333_v20 }
 0x153   : > { %1661 = vmatprep.subr.bf16.mxu0 %v4711_v0 }
 0x155   : > { %1241 = vmatpush2.bf16.msra.mxu1 %v4334_v22  ;;  %1370 = vmatmul.mubr.bf16.vlgmr.msra.gmra.mxu0 %v5000_v47  ;;  %v4357_v47 = vld [vmem:[%s5845_s5 + $0x130] sm:$0xff]   ;;  %v4385_v22 = vld [vmem:[%s5848_s8 + $0x108] ss:$16 sps:$4 sm:$0xff]  }
 0x156   : > { %1242 = vmatprep.subr.bf16.mxu1 %v4711_v0  ;;  %1662 = vmatpush1.bf16.msra.mxu0 %v4335_v24  ;;  %v4390_v24 = vld [vmem:[%s5848_s8 + $0xe4] ss:$16 sps:$4 sm:$0xff]  }
 0x157   : > { %3841 = vmatprep.mubr.msk.bf16.mxu0 %vm726_vm1, %v1416_v25  ;;  %1663 = vmatprep.subr.bf16.mxu0 %v4711_v0 }
 0x159   : > { %1243 = vmatpush2.bf16.msra.mxu1 %v4336_v26  ;;  %v4388_v26 = vld [vmem:[%s5848_s8 + $0xe0] ss:$16 sps:$4 sm:$0xff]  }
 0x15a   : > { %1505 = vmatprep.subr.bf16.mxu1 %v4711_v0  ;;  %1664 = vmatpush1.bf16.msra.mxu0 %v4337_v27  ;;  %v4391_v27 = vld [vmem:[%s5848_s8 + $0xe8] ss:$16 sps:$4 sm:$0xff]  }
 0x15b   : > { %1665 = vmatprep.subr.bf16.mxu0 %v4711_v0 }
 0x15c   : > { %1245 = vmatmul.mubr.bf16.vlgmr.msra.gmra.mxu1 %v5012_v56  ;;  %v1415_v56 = vrot.slane %v1382_v54, 1 }
 0x15d   : > { %1506 = vmatpush1.bf16.msra.mxu1 %v4338_v28  ;;  %3798 = vmatprep.mubr.msk.bf16.mxu1 %vm726_vm1, %v1416_v25  ;;  %v4393_v25 = vld [vmem:[%s5848_s8 + $0xec] ss:$16 sps:$4 sm:$0xff]   ;;  %v4396_v28 = vld [vmem:[%s5848_s8 + $0xc4] ss:$16 sps:$4 sm:$0xff]  }
 0x15e   : > { %1507 = vmatprep.subr.bf16.mxu1 %v4711_v0  ;;  %1666 = vmatpush1.bf16.msra.mxu0 %v4339_v29  ;;  %v4399_v29 = vld [vmem:[%s5848_s8 + $0xcc] ss:$16 sps:$4 sm:$0xff]  }
 0x15f   : > { %1667 = vmatprep.subr.bf16.mxu0 %v4711_v0 }
 0x161   : > { %1508 = vmatpush1.bf16.msra.mxu1 %v4340_v30  ;;  %v4394_v30 = vld [vmem:[%s5848_s8 + $0xc0] ss:$16 sps:$4 sm:$0xff]  }
 0x162   : > { %1509 = vmatprep.subr.bf16.mxu1 %v4711_v0  ;;  %1668 = vmatpush1.bf16.msra.mxu0 %v4341_v31  ;;  %v4397_v31 = vld [vmem:[%s5848_s8 + $0xc8] ss:$16 sps:$4 sm:$0xff]  }
 0x163   : > { %1669 = vmatprep.subr.bf16.mxu0 %v4711_v0 }
 0x165   : > { %1510 = vmatpush1.bf16.msra.mxu1 %v4342_v32  ;;  %v4402_v32 = vld [vmem:[%s5848_s8 + $0xa4] ss:$16 sps:$4 sm:$0xff]  }
 0x166   : > { %1511 = vmatprep.subr.bf16.mxu1 %v4711_v0  ;;  %1670 = vmatpush1.bf16.msra.mxu0 %v4343_v33  ;;  %v4405_v33 = vld [vmem:[%s5848_s8 + $0xac] ss:$16 sps:$4 sm:$0xff]  }
 0x167   : > { %1671 = vmatprep.subr.bf16.mxu0 %v4711_v0 }
 0x169   : > { %1512 = vmatpush1.bf16.msra.mxu1 %v4344_v34 }
 0x16a   : > { %1513 = vmatprep.subr.bf16.mxu1 %v4711_v0  ;;  %1672 = vmatpush1.bf16.msra.mxu0 %v4345_v35 }
 0x16b   : > { %1673 = vmatprep.subr.bf16.mxu0 %v4711_v0 }
 0x16d   : > { %1514 = vmatpush1.bf16.msra.mxu1 %v4346_v36 }
 0x16e   : > { %1515 = vmatprep.subr.bf16.mxu1 %v4711_v0  ;;  %1674 = vmatpush1.bf16.msra.mxu0 %v4347_v37 }
 0x16f   : > { %1675 = vmatprep.subr.bf16.mxu0 %v4711_v0 }
 0x171   : > { %1516 = vmatpush1.bf16.msra.mxu1 %v4348_v38 }
 0x172   : > { %1517 = vmatprep.subr.bf16.mxu1 %v4711_v0  ;;  %1676 = vmatpush1.bf16.msra.mxu0 %v4349_v39 }
 0x173   : > { %1681 = vmatprep.subr.bf16.mxu0 %v4711_v0 }
 0x175   : > { %1518 = vmatpush1.bf16.msra.mxu1 %v4350_v40 }
 0x176   : > { %1519 = vmatprep.subr.bf16.mxu1 %v4711_v0  ;;  %1682 = vmatpush2.bf16.msra.mxu0 %v4351_v41 }
 0x177   : > { %1683 = vmatprep.subr.bf16.mxu0 %v4711_v0 }
 0x179   : > { %1520 = vmatpush1.bf16.msra.mxu1 %v4352_v42 }
 0x17a   : > { %1525 = vmatprep.subr.bf16.mxu1 %v4711_v0  ;;  %1684 = vmatpush2.bf16.msra.mxu0 %v4353_v43 }
 0x17b   : > { %1685 = vmatprep.subr.bf16.mxu0 %v4711_v0 }
 0x17d   : > { %1526 = vmatpush2.bf16.msra.mxu1 %v4354_v44 }
 0x17e   : > { %1527 = vmatprep.subr.bf16.mxu1 %v4711_v0  ;;  %1686 = vmatpush2.bf16.msra.mxu0 %v4355_v45  ;;  %v3842_v45 = vld [vmem:[%s5846_s6] ss:$0 sm:$0xff] }
 0x17f   : > { %1687 = vmatprep.subr.bf16.mxu0 %v4711_v0 }
 0x181   : > { %1528 = vmatpush2.bf16.msra.mxu1 %v4356_v46 }
 0x182   : > { %1529 = vmatprep.subr.bf16.mxu1 %v4711_v0  ;;  %1688 = vmatpush2.bf16.msra.mxu0 %v4357_v47 }
 0x183   : > { %1689 = vmatprep.subr.bf16.mxu0 %v4711_v0 }
 0x185   : > { %1530 = vmatpush2.bf16.msra.mxu1 %v4358_v48 }
 0x186   : > { %1531 = vmatprep.subr.bf16.mxu1 %v4711_v0  ;;  %1690 = vmatpush2.bf16.msra.mxu0 %v4359_v49 }
 0x187   : > { %1691 = vmatprep.subr.bf16.mxu0 %v4711_v0 }
 0x189   : > { %1532 = vmatpush2.bf16.msra.mxu1 %v4360_v50 }
 0x18a   : > { %1533 = vmatprep.subr.bf16.mxu1 %v4711_v0  ;;  %1692 = vmatpush2.bf16.msra.mxu0 %v4361_v52 }
 0x18b   : > { %1961 = vmatprep.subr.bf16.mxu0 %v4369_v59 }
 0x18d   : > { %1534 = vmatpush2.bf16.msra.mxu1 %v4362_v55  ;;  %1694 = vmatmul.mubr.bf16.vlgmr.msra.gmra.mxu0 %v1415_v56 }
 0x18e   : > { %1535 = vmatprep.subr.bf16.mxu1 %v4711_v0  ;;  %1989 = vmatprep.mubr.bf16.mxu0 %v4711_v0 }
 0x18f   : > { %1962 = vmatpush1.bf16.msra.mxu0 %v4367_v62 }
 0x190   : > { %1963 = vmatprep.subr.bf16.mxu0 %v4375_v5 }
 0x191   : > { %1536 = vmatpush2.bf16.msra.mxu1 %v4363_v57 }
 0x192   : > { %1920 = vmatprep.subr.bf16.mxu1 %v4366_v58 }
 0x193   : > { %1964 = vmatpush1.bf16.msra.mxu0 %v4373_v7 }
 0x194   : > { %1538 = vmatmul.mubr.bf16.vlgmr.msra.gmra.mxu1 %v1415_v56  ;;  %1965 = vmatprep.subr.bf16.mxu0 %v4381_v12 }
 0x195   : > { %1948 = vmatprep.mubr.bf16.mxu1 %v4711_v0  ;;  %1921 = vmatpush1.bf16.msra.mxu1 %v4364_v61 }
 0x196   : > { %1922 = vmatprep.subr.bf16.mxu1 %v4372_v4 }
 0x197   : > { %1966 = vmatpush1.bf16.msra.mxu0 %v4379_v15  ;;  %v4400_v15 = vld [vmem:[%s5848_s8 + $0xa0] ss:$16 sps:$4 sm:$0xff]  }
 0x198   : > { %1967 = vmatprep.subr.bf16.mxu0 %v4387_v19  ;;  %v4408_v19 = vld [vmem:[%s5848_s8 + $0x84] ss:$16 sps:$4 sm:$0xff]  }
 0x199   : > { %1923 = vmatpush1.bf16.msra.mxu1 %v4370_v6 }
 0x19a   : > { %1924 = vmatprep.subr.bf16.mxu1 %v4378_v11 }
 0x19b   : > { %1968 = vmatpush1.bf16.msra.mxu0 %v4385_v22  ;;  %v4409_v22 = vld [vmem:[%s5848_s8 + $0x88] ss:$16 sps:$4 sm:$0xff]  }
 0x19c   : > { %1969 = vmatprep.subr.bf16.mxu0 %v4393_v25  ;;  %v4412_v25 = vld [vmem:[%s5848_s8 + $0x60] ss:$16 sps:$4 sm:$0xff]  }
 0x19d   : > { %1925 = vmatpush1.bf16.msra.mxu1 %v4376_v14 }
 0x19e   : > { %1926 = vmatprep.subr.bf16.mxu1 %v4384_v18 }
 0x19f   : > { %1970 = vmatpush1.bf16.msra.mxu0 %v4391_v27  ;;  %v4420_v27 = vld [vmem:[%s5848_s8 + $0x44] ss:$16 sps:$4 sm:$0xff]  }
 0x1a0   : > { %1971 = vmatprep.subr.bf16.mxu0 %v4399_v29  ;;  %v4418_v29 = vld [vmem:[%s5848_s8 + $0x40] ss:$16 sps:$4 sm:$0xff]  }
 0x1a1   : > { %1927 = vmatpush1.bf16.msra.mxu1 %v4382_v21  ;;  %v4406_v21 = vld [vmem:[%s5848_s8 + $0x80] ss:$16 sps:$4 sm:$0xff]  }
 0x1a2   : > { %1928 = vmatprep.subr.bf16.mxu1 %v4390_v24  ;;  %v4417_v24 = vld [vmem:[%s5848_s8 + $0x6c] ss:$16 sps:$4 sm:$0xff]  }
 0x1a3   : > { %1972 = vmatpush1.bf16.msra.mxu0 %v4397_v31  ;;  %v4426_v31 = vld [vmem:[%s5848_s8 + $0x24] ss:$16 sps:$4 sm:$0xff]  }
 0x1a4   : > { %2166 = vmatprep.subr.bf16.mxu0 %v4405_v33  ;;  %v4424_v33 = vld [vmem:[%s5848_s8 + $0x20] ss:$16 sps:$4 sm:$0xff]  }
 0x1a5   : > { %1929 = vmatpush1.bf16.msra.mxu1 %v4388_v26  ;;  %v4415_v26 = vld [vmem:[%s5848_s8 + $0x68] ss:$16 sps:$4 sm:$0xff]  }
 0x1a6   : > { %1930 = vmatprep.subr.bf16.mxu1 %v4396_v28  ;;  %v4423_v28 = vld [vmem:[%s5848_s8 + $0x4c] ss:$16 sps:$4 sm:$0xff]  }
 0x1a9   : > { %1931 = vmatpush1.bf16.msra.mxu1 %v4394_v30  ;;  %v4421_v30 = vld [vmem:[%s5848_s8 + $0x48] ss:$16 sps:$4 sm:$0xff]  }
 0x1aa   : > { %2125 = vmatprep.subr.bf16.mxu1 %v4402_v32  ;;  %v4429_v32 = vld [vmem:[%s5848_s8 + $0x2c] ss:$16 sps:$4 sm:$0xff]  }
 0x1dd   : > { %v1092_v1 = vpop.f32.mrf.mxu0 }
 0x1df   : > { %v1094_v3 = vpop.f32.mrf.mxu0 }
 0x1e1   : > { %v1095_v8 = vpop.f32.mrf.mxu0 }
 0x1e3   : > { %v1097_v10 = vpop.f32.mrf.mxu0 }
 0x1e4   : > { %v964_v9 = vpop.f32.mrf.mxu1 }
 0x1e5   : > { %v1093_v13 = vadd.f32 %v1092_v1, %v964_v9 }
 0x1e6   : > { %v966_v16 = vpop.f32.mrf.mxu1 }
 0x1e7   : > { %v4403_v16 = vld [vmem:[%s5848_s8 + $0xa8] ss:$16 sps:$4 sm:$0xff]  }
 0x1e8   : > { %v967_v17 = vpop.f32.mrf.mxu1 }
 0x1e9   : > { %v1096_v20 = vadd.f32 %v1095_v8, %v967_v17 }
 0x1ea   : > { %v969_v23 = vpop.f32.mrf.mxu1 }
 0x1eb   : > { %v4414_v23 = vld [vmem:[%s5848_s8 + $0x64] ss:$16 sps:$4 sm:$0xff]  }
 0x215   : > { %v1371_v34 = vpop.f32.mrf.mxu0 }
 0x217   : > { %v1373_v35 = vpop.f32.mrf.mxu0 }
 0x218   : > { %v4432_v35 = vld [vmem:[%s5848_s8 + $0x4] ss:$16 sps:$4 sm:$0xff]  }
 0x219   : > { %v1374_v36 = vpop.f32.mrf.mxu0 }
 0x21b   : > { %v1376_v38 = vpop.f32.mrf.mxu0 }
 0x21c   : > { %v1246_v37 = vpop.f32.mrf.mxu1  ;;  %v4433_v38 = vld [vmem:[%s5848_s8 + $0x8] ss:$16 sps:$4 sm:$0xff]  }
 0x21d   : > { %v1372_v42 = vadd.f32 %v1371_v34, %v1246_v37  ;;  %v4427_v34 = vld [vmem:[%s5848_s8 + $0x28] ss:$16 sps:$4 sm:$0xff]   ;;  %v4430_v37 = vld [vmem:[%s5848_s8] ss:$16 sps:$4 sm:$0xff]  }
 0x21e   : > { %v1248_v39 = vpop.f32.mrf.mxu1 }
 0x21f   : > { %v4438_v39 = vld [vmem:[%s5848_s8 + $0x224] ss:$16 sps:$4 sm:$0xff]  }
 0x220   : > { %v1249_v40 = vpop.f32.mrf.mxu1 }
 0x221   : > { %v1375_v47 = vadd.f32 %v1374_v36, %v1249_v40  ;;  %v4435_v36 = vld [vmem:[%s5848_s8 + $0xc] ss:$16 sps:$4 sm:$0xff]  }
 0x222   : > { %v1251_v41 = vpop.f32.mrf.mxu1  ;;  %v4441_v40 = vld [vmem:[%s5848_s8 + $0x22c] ss:$16 sps:$4 sm:$0xff]  }
 0x24d   : > { %v1695_v43 = vpop.f32.mrf.mxu0 }
 0x24e   : > { %v1702_v44 = vadd.f32 %v1695_v43, %v1372_v42  ;;  %v4436_v42 = vld [vmem:[%s5848_s8 + $0x220] ss:$16 sps:$4 sm:$0xff]   ;;  %v4439_v43 = vld [vmem:[%s5848_s8 + $0x228] ss:$16 sps:$4 sm:$0xff]  }
 0x24f   : > { %v1697_v46 = vpop.f32.mrf.mxu0 }
 0x250   : > { %v1724_v49 = vmul.f32 %v3842_v45, %v1702_v44  ;;  %v4447_v46 = vld [vmem:[%s5848_s8 + $0x20c] ss:$16 sps:$4 sm:$0xff]  }
 0x251   : > { %v1698_v48 = vpop.f32.mrf.mxu0 }
 0x252   : > { %v1703_v50 = vadd.f32 %v1698_v48, %v1375_v47  ;;  %v1726_v56 = vadd.f32 %v3843_v51, %v1724_v49  ;;  %v4442_v47 = vld [vmem:[%s5848_s8 + $0x200] ss:$16 sps:$4 sm:$0xff]   ;;  %v4445_v48 = vld [vmem:[%s5848_s8 + $0x208] ss:$16 sps:$4 sm:$0xff]   ;;  %v4450_v49 = vld [vmem:[%s5848_s8 + $0x1e4] ss:$16 sps:$4 sm:$0xff]  }
 0x253   : > { %v1700_v53 = vpop.f32.mrf.mxu0 }
 0x254   : > { %v1539_v52 = vpop.f32.mrf.mxu1  ;;  %v1725_v57 = vmul.f32 %v3842_v45, %v1703_v50  ;;  %v1728_v3 = vmax.f32 %v1726_v56, 0.0  ;;  %v4453_v50 = vld [vmem:[%s5848_s8 + $0x1ec] ss:$16 sps:$4 sm:$0xff]   ;;  %v4456_v53 = vld [vmem:[%s5848_s8 + $0x1c4] ss:$16 sps:$4 sm:$0xff]  }
 0x255   : > { %v1546_v54 = vadd.f32 %v1539_v52, %v1093_v13  ;;  %v4451_v52 = vld [vmem:[%s5848_s8 + $0x1e8] ss:$16 sps:$4 sm:$0xff]  }
 0x256   : > { %v1541_v55 = vpop.f32.mrf.mxu1  ;;  %v1727_v4 = vadd.f32 %v3843_v51, %v1725_v57  ;;  %v4457_v56 = vld [vmem:[%s5848_s8 + $0x1c8] ss:$16 sps:$4 sm:$0xff]   ;;  %v4462_v57 = vld [vmem:[%s5848_s8 + $0x1a4] ss:$16 sps:$4 sm:$0xff]  }
 0x257   : > { %v1711_v58 = vmul.f32 %v3842_v45, %v1546_v54  ;;  %v4459_v54 = vld [vmem:[%s5848_s8 + $0x1cc] ss:$16 sps:$4 sm:$0xff]   ;;  %v4454_v55 = vld [vmem:[%s5848_s8 + $0x1c0] ss:$16 sps:$4 sm:$0xff]  }
 0x258   : > { %v1542_v59 = vpop.f32.mrf.mxu1  ;;  %v1729_v9 = vmax.f32 %v1727_v4, 0.0  ;;  %v4469_v4 = vld [vmem:[%s5848_s8 + $0x188] ss:$16 sps:$4 sm:$0xff]  }
 0x259   : > { %v1720_v61 = vadd.f32 %v3843_v51, %v1711_v58  ;;  %v1547_v62 = vadd.f32 %v1542_v59, %v1096_v20  ;;  %v4411_v20 = vld [vmem:[%s5848_s8 + $0x8c] ss:$16 sps:$4 sm:$0xff]   ;;  %v4460_v59 = vld [vmem:[%s5848_s8 + $0x1a0] ss:$16 sps:$4 sm:$0xff]  }
 0x25a   : > { %v1544_v1 = vpop.f32.mrf.mxu1  ;;  %v4465_v58 = vld [vmem:[%s5848_s8 + $0x1ac] ss:$16 sps:$4 sm:$0xff]  }
 0x25b   : > { %v1722_v5 = vmax.f32 %v1720_v61, 0.0  ;;  %v1712_v6 = vmul.f32 %v3842_v45, %v1547_v62  ;;  %v4444_v45 = vld [vmem:[%s5848_s8 + $0x204] ss:$16 sps:$4 sm:$0xff]   ;;  %v4463_v61 = vld [vmem:[%s5848_s8 + $0x1a8] ss:$16 sps:$4 sm:$0xff]  }
 0x25c   : > { %v4468_v62 = vld [vmem:[%s5848_s8 + $0x184] ss:$16 sps:$4 sm:$0xff]   ;;  %v4471_v1 = vld [vmem:[%s5848_s8 + $0x18c] ss:$16 sps:$4 sm:$0xff]  }
 0x25d   : > { %v1730_v7 = vmax.f32 %v1722_v5, %v1728_v3  ;;  %v1721_v8 = vadd.f32 %v3843_v51, %v1712_v6  ;;  %v4448_v51 = vld [vmem:[%s5848_s8 + $0x1e0] ss:$16 sps:$4 sm:$0xff]   ;;  %v4474_v5 = vld [vmem:[%s5848_s8 + $0x2e4] ss:$16 sps:$4 sm:$0xff]   ;;  %v4477_v6 = vld [vmem:[%s5848_s8 + $0x2ec] ss:$16 sps:$4 sm:$0xff]  }
 0x25e   : > { %v4466_v3 = vld [vmem:[%s5848_s8 + $0x180] ss:$16 sps:$4 sm:$0xff]  }
 0x25f   : > { %1732 = vst.msk [vmem:[#allocation3] sm:$0xff] %vm726_vm1, %v1730_v7  ;;  %v1723_v10 = vmax.f32 %v1721_v8, 0.0  ;;  %v4472_v8 = vld [vmem:[%s5848_s8 + $0x2e0] ss:$16 sps:$4 sm:$0xff]  }
 0x261   : > { %v1731_v11 = vmax.f32 %v1723_v10, %v1729_v9  ;;  %v4475_v9 = vld [vmem:[%s5848_s8 + $0x2e8] ss:$16 sps:$4 sm:$0xff]  }
 0x263   : > { %1734 = vst.msk [vmem:[#allocation3 + $0x8] sm:$0xf] %vm1733_vm3, %v1731_v11  ;;  %v4480_v11 = vld [vmem:[%s5848_s8 + $0x2c4] ss:$16 sps:$4 sm:$0xff]  }
 0x26a   : > { %v1735_v12 = vld [vmem:[#allocation3] ss:$2 sm:$0x3f]  ;;  %v1737_v13 = vld [vmem:[#allocation3 + $0x1] ss:$2 sm:$0x3f] }
 0x26b   : > { %v1738_v14 = vmax.f32 %v1735_v12, %v1737_v13  ;;  %v4483_v12 = vld [vmem:[%s5848_s8 + $0x2cc] ss:$16 sps:$4 sm:$0xff]   ;;  %v4478_v13 = vld [vmem:[%s5848_s8 + $0x2c0] ss:$16 sps:$4 sm:$0xff]  }
 0x26d   : > { %1739 = vst.msk [vmem:[#allocation4] sm:$0x3f] %vm729_vm2, %v1738_v14  ;;  %v4481_v14 = vld [vmem:[%s5848_s8 + $0x2c8] ss:$16 sps:$4 sm:$0xff]  }
 0x274   : > { %v1766_v17 = vld [vmem:[#allocation4 + $0x1] sm:$0x1]  ;;  %v1740_v41 = vld [vmem:[#allocation4] sm:$0x1]  ;;  %v2203_v7 = vld [vmem:[#allocation4 + $0x2] sm:$0x1] }
 0x275   : > { %v1767_v18 = vpack.c.bf16 %v1766_v17, %v1766_v17  ;;  %v1741_v44 = vpack.c.bf16 %v1740_v41, %v1740_v41  ;;  %v2204_v10 = vpack.c.bf16 %v2203_v7, %v2203_v7  ;;  %v4484_v17 = vld [vmem:[%s5848_s8 + $0x2a0] ss:$16 sps:$4 sm:$0xff]   ;;  %v4522_v41 = vld [vmem:[%s5848_s8 + $0x364] ss:$16 sps:$4 sm:$0xff]  }
 0x276   : > { %v4558_v7 = vld [vmem:[%s5848_s8 + $0x424] ss:$16 sps:$4 sm:$0xff]  }
 0x277   : > { %3892 = vmatmul.mubr.msk.bf16.vlgmr.msra.gmra.mxu1 %vm726_vm1, %v1767_v18  ;;  %3893 = vmatmul.mubr.msk.bf16.vlgmr.msra.gmra.mxu0 %vm726_vm1, %v1767_v18  ;;  %v4487_v18 = vld [vmem:[%s5848_s8 + $0x2a8] ss:$16 sps:$4 sm:$0xff]  }
 0x278   : > { %2126 = vmatpush1.bf16.msra.mxu1 %v4400_v15  ;;  %2167 = vmatpush1.bf16.msra.mxu0 %v4403_v16  ;;  %v4486_v15 = vld [vmem:[%s5848_s8 + $0x2a4] ss:$16 sps:$4 sm:$0xff]   ;;  %v4489_v16 = vld [vmem:[%s5848_s8 + $0x2ac] ss:$16 sps:$4 sm:$0xff]  }
 0x279   : > { %2127 = vmatprep.subr.bf16.mxu1 %v4408_v19  ;;  %2168 = vmatprep.subr.bf16.mxu0 %v4411_v20  ;;  %v4492_v19 = vld [vmem:[%s5848_s8 + $0x284] ss:$16 sps:$4 sm:$0xff]   ;;  %v4495_v20 = vld [vmem:[%s5848_s8 + $0x28c] ss:$16 sps:$4 sm:$0xff]  }
 0x27a   : > { %2153 = vmatprep.mubr.bf16.mxu1 %v4711_v0  ;;  %2194 = vmatprep.mubr.bf16.mxu0 %v4711_v0 }
 0x27c   : > { %2128 = vmatpush1.bf16.msra.mxu1 %v4406_v21  ;;  %2169 = vmatpush1.bf16.msra.mxu0 %v4409_v22  ;;  %v4490_v21 = vld [vmem:[%s5848_s8 + $0x280] ss:$16 sps:$4 sm:$0xff]   ;;  %v4493_v22 = vld [vmem:[%s5848_s8 + $0x288] ss:$16 sps:$4 sm:$0xff]  }
 0x27d   : > { %2129 = vmatprep.subr.bf16.mxu1 %v4414_v23  ;;  %2170 = vmatprep.subr.bf16.mxu0 %v4417_v24  ;;  %v4498_v23 = vld [vmem:[%s5848_s8 + $0x264] ss:$16 sps:$4 sm:$0xff]   ;;  %v4501_v24 = vld [vmem:[%s5848_s8 + $0x26c] ss:$16 sps:$4 sm:$0xff]  }
 0x280   : > { %2130 = vmatpush1.bf16.msra.mxu1 %v4412_v25  ;;  %2171 = vmatpush1.bf16.msra.mxu0 %v4415_v26  ;;  %v4496_v25 = vld [vmem:[%s5848_s8 + $0x260] ss:$16 sps:$4 sm:$0xff]   ;;  %v4499_v26 = vld [vmem:[%s5848_s8 + $0x268] ss:$16 sps:$4 sm:$0xff]  }
 0x281   : > { %2131 = vmatprep.subr.bf16.mxu1 %v4420_v27  ;;  %2172 = vmatprep.subr.bf16.mxu0 %v4423_v28  ;;  %v4504_v27 = vld [vmem:[%s5848_s8 + $0x244] ss:$16 sps:$4 sm:$0xff]   ;;  %v4507_v28 = vld [vmem:[%s5848_s8 + $0x24c] ss:$16 sps:$4 sm:$0xff]  }
 0x284   : > { %2132 = vmatpush1.bf16.msra.mxu1 %v4418_v29  ;;  %2173 = vmatpush1.bf16.msra.mxu0 %v4421_v30  ;;  %v4502_v29 = vld [vmem:[%s5848_s8 + $0x240] ss:$16 sps:$4 sm:$0xff]   ;;  %v4505_v30 = vld [vmem:[%s5848_s8 + $0x248] ss:$16 sps:$4 sm:$0xff]  }
 0x285   : > { %2133 = vmatprep.subr.bf16.mxu1 %v4426_v31  ;;  %2174 = vmatprep.subr.bf16.mxu0 %v4429_v32  ;;  %v4510_v31 = vld [vmem:[%s5848_s8 + $0x3a4] ss:$16 sps:$4 sm:$0xff]   ;;  %v4513_v32 = vld [vmem:[%s5848_s8 + $0x3ac] ss:$16 sps:$4 sm:$0xff]  }
 0x288   : > { %2134 = vmatpush1.bf16.msra.mxu1 %v4424_v33  ;;  %2175 = vmatpush1.bf16.msra.mxu0 %v4427_v34  ;;  %v2439_v33 = vld [vmem:[#allocation4 + $0x3] sm:$0x1] }
 0x289   : > { %2135 = vmatprep.subr.bf16.mxu1 %v4432_v35  ;;  %2176 = vmatprep.subr.bf16.mxu0 %v4435_v36  ;;  %v4508_v34 = vld [vmem:[%s5848_s8 + $0x3a0] ss:$16 sps:$4 sm:$0xff]   ;;  %v4511_v35 = vld [vmem:[%s5848_s8 + $0x3a8] ss:$16 sps:$4 sm:$0xff]   ;;  %v2440_v36 = vpack.c.bf16 %v2439_v33, %v2439_v33 }
 0x28a   : > { %v4589_v33 = vld [vmem:[%s5850_s10 + $0xe8] sm:$0xff]  }
 0x28c   : > { %2136 = vmatpush1.bf16.msra.mxu1 %v4430_v37  ;;  %2177 = vmatpush1.bf16.msra.mxu0 %v4433_v38  ;;  %v4516_v37 = vld [vmem:[%s5848_s8 + $0x384] ss:$16 sps:$4 sm:$0xff]   ;;  %v4519_v38 = vld [vmem:[%s5848_s8 + $0x38c] ss:$16 sps:$4 sm:$0xff]  }
 0x28d   : > { %2357 = vmatprep.subr.bf16.mxu1 %v4438_v39  ;;  %2398 = vmatprep.subr.bf16.mxu0 %v4441_v40  ;;  %v4514_v39 = vld [vmem:[%s5848_s8 + $0x380] ss:$16 sps:$4 sm:$0xff]   ;;  %v4517_v40 = vld [vmem:[%s5848_s8 + $0x388] ss:$16 sps:$4 sm:$0xff]  }
 0x28f   : > { %3918 = vmatmul.mubr.msk.bf16.vlgmr.msra.gmra.mxu1 %vm726_vm1, %v1741_v44  ;;  %3919 = vmatmul.mubr.msk.bf16.vlgmr.msra.gmra.mxu0 %vm726_vm1, %v1741_v44  ;;  %v4523_v44 = vld [vmem:[%s5848_s8 + $0x368] ss:$16 sps:$4 sm:$0xff]  }
 0x290   : > { %2358 = vmatpush1.bf16.msra.mxu1 %v4436_v42  ;;  %2399 = vmatpush1.bf16.msra.mxu0 %v4439_v43  ;;  %v4525_v42 = vld [vmem:[%s5848_s8 + $0x36c] ss:$16 sps:$4 sm:$0xff]   ;;  %v4520_v43 = vld [vmem:[%s5848_s8 + $0x360] ss:$16 sps:$4 sm:$0xff]  }
 0x291   : > { %2359 = vmatprep.subr.bf16.mxu1 %v4444_v45  ;;  %2400 = vmatprep.subr.bf16.mxu0 %v4447_v46  ;;  %v4528_v45 = vld [vmem:[%s5848_s8 + $0x344] ss:$16 sps:$4 sm:$0xff]   ;;  %v4531_v46 = vld [vmem:[%s5848_s8 + $0x34c] ss:$16 sps:$4 sm:$0xff]  }
 0x292   : > { %2385 = vmatprep.mubr.bf16.mxu1 %v4711_v0  ;;  %2426 = vmatprep.mubr.bf16.mxu0 %v4711_v0 }
 0x294   : > { %2360 = vmatpush1.bf16.msra.mxu1 %v4442_v47  ;;  %2401 = vmatpush1.bf16.msra.mxu0 %v4445_v48  ;;  %v4526_v47 = vld [vmem:[%s5848_s8 + $0x340] ss:$16 sps:$4 sm:$0xff]   ;;  %v4529_v48 = vld [vmem:[%s5848_s8 + $0x348] ss:$16 sps:$4 sm:$0xff]  }
 0x295   : > { %2361 = vmatprep.subr.bf16.mxu1 %v4450_v49  ;;  %2402 = vmatprep.subr.bf16.mxu0 %v4453_v50  ;;  %v4534_v49 = vld [vmem:[%s5848_s8 + $0x324] ss:$16 sps:$4 sm:$0xff]   ;;  %v4537_v50 = vld [vmem:[%s5848_s8 + $0x32c] ss:$16 sps:$4 sm:$0xff]  }
 0x298   : > { %2362 = vmatpush1.bf16.msra.mxu1 %v4448_v51  ;;  %2403 = vmatpush1.bf16.msra.mxu0 %v4451_v52  ;;  %v4532_v51 = vld [vmem:[%s5848_s8 + $0x320] ss:$16 sps:$4 sm:$0xff]   ;;  %v4535_v52 = vld [vmem:[%s5848_s8 + $0x328] ss:$16 sps:$4 sm:$0xff]  }
 0x299   : > { %2363 = vmatprep.subr.bf16.mxu1 %v4456_v53  ;;  %2404 = vmatprep.subr.bf16.mxu0 %v4459_v54  ;;  %v4540_v53 = vld [vmem:[%s5848_s8 + $0x304] ss:$16 sps:$4 sm:$0xff]   ;;  %v4543_v54 = vld [vmem:[%s5848_s8 + $0x30c] ss:$16 sps:$4 sm:$0xff]  }
 0x29c   : > { %2364 = vmatpush1.bf16.msra.mxu1 %v4454_v55  ;;  %2405 = vmatpush1.bf16.msra.mxu0 %v4457_v56  ;;  %v4538_v55 = vld [vmem:[%s5848_s8 + $0x300] ss:$16 sps:$4 sm:$0xff]   ;;  %v4541_v56 = vld [vmem:[%s5848_s8 + $0x308] ss:$16 sps:$4 sm:$0xff]  }
 0x29d   : > { %2365 = vmatprep.subr.bf16.mxu1 %v4462_v57  ;;  %2406 = vmatprep.subr.bf16.mxu0 %v4465_v58  ;;  %v4546_v57 = vld [vmem:[%s5848_s8 + $0x464] ss:$16 sps:$4 sm:$0xff]   ;;  %v4549_v58 = vld [vmem:[%s5848_s8 + $0x46c] ss:$16 sps:$4 sm:$0xff]  }
 0x2a0   : > { %2366 = vmatpush1.bf16.msra.mxu1 %v4460_v59  ;;  %2407 = vmatpush1.bf16.msra.mxu0 %v4463_v61  ;;  %v2675_v59 = vld [vmem:[#allocation4 + $0x4] sm:$0x1]  ;;  %v4544_v61 = vld [vmem:[%s5848_s8 + $0x460] ss:$16 sps:$4 sm:$0xff]  }
 0x2a1   : > { %2367 = vmatprep.subr.bf16.mxu1 %v4468_v62  ;;  %2408 = vmatprep.subr.bf16.mxu0 %v4471_v1  ;;  %v4547_v62 = vld [vmem:[%s5848_s8 + $0x468] ss:$16 sps:$4 sm:$0xff]   ;;  %v2676_v1 = vpack.c.bf16 %v2675_v59, %v2675_v59 }
 0x2a4   : > { %2368 = vmatpush1.bf16.msra.mxu1 %v4466_v3  ;;  %2409 = vmatpush1.bf16.msra.mxu0 %v4469_v4  ;;  %v4552_v3 = vld [vmem:[%s5848_s8 + $0x444] ss:$16 sps:$4 sm:$0xff]   ;;  %v4555_v4 = vld [vmem:[%s5848_s8 + $0x44c] ss:$16 sps:$4 sm:$0xff]  }
 0x2a5   : > { %2593 = vmatprep.subr.bf16.mxu1 %v4474_v5  ;;  %2634 = vmatprep.subr.bf16.mxu0 %v4477_v6  ;;  %v4550_v5 = vld [vmem:[%s5848_s8 + $0x440] ss:$16 sps:$4 sm:$0xff]   ;;  %v4553_v6 = vld [vmem:[%s5848_s8 + $0x448] ss:$16 sps:$4 sm:$0xff]  }
 0x2a7   : > { %3968 = vmatmul.mubr.msk.bf16.vlgmr.msra.gmra.mxu1 %vm726_vm1, %v2204_v10  ;;  %3969 = vmatmul.mubr.msk.bf16.vlgmr.msra.gmra.mxu0 %vm726_vm1, %v2204_v10  ;;  %v4559_v10 = vld [vmem:[%s5848_s8 + $0x428] ss:$16 sps:$4 sm:$0xff]  }
 0x2a8   : > { %2594 = vmatpush1.bf16.msra.mxu1 %v4472_v8  ;;  %2635 = vmatpush1.bf16.msra.mxu0 %v4475_v9  ;;  %v4561_v8 = vld [vmem:[%s5848_s8 + $0x42c] ss:$16 sps:$4 sm:$0xff]   ;;  %v4556_v9 = vld [vmem:[%s5848_s8 + $0x420] ss:$16 sps:$4 sm:$0xff]  }
 0x2a9   : > { %2595 = vmatprep.subr.bf16.mxu1 %v4480_v11  ;;  %2636 = vmatprep.subr.bf16.mxu0 %v4483_v12  ;;  %v4564_v11 = vld [vmem:[%s5848_s8 + $0x404] ss:$16 sps:$4 sm:$0xff]   ;;  %v4562_v12 = vld [vmem:[%s5848_s8 + $0x400] ss:$16 sps:$4 sm:$0xff]  }
 0x2aa   : > { %2621 = vmatprep.mubr.bf16.mxu1 %v4711_v0  ;;  %2662 = vmatprep.mubr.bf16.mxu0 %v4711_v0 }
 0x2ac   : > { %2596 = vmatpush1.bf16.msra.mxu1 %v4478_v13  ;;  %2637 = vmatpush1.bf16.msra.mxu0 %v4481_v14  ;;  %v4565_v13 = vld [vmem:[%s5848_s8 + $0x408] ss:$16 sps:$4 sm:$0xff]   ;;  %v4570_v14 = vld [vmem:[%s5848_s8 + $0x3e4] ss:$16 sps:$4 sm:$0xff]  }
 0x2ad   : > { %2597 = vmatprep.subr.bf16.mxu1 %v4486_v15  ;;  %2638 = vmatprep.subr.bf16.mxu0 %v4489_v16  ;;  %v4573_v15 = vld [vmem:[%s5848_s8 + $0x3ec] ss:$16 sps:$4 sm:$0xff]   ;;  %v4568_v16 = vld [vmem:[%s5848_s8 + $0x3e0] ss:$16 sps:$4 sm:$0xff]  }
 0x2b0   : > { %2598 = vmatpush1.bf16.msra.mxu1 %v4484_v17  ;;  %2639 = vmatpush1.bf16.msra.mxu0 %v4487_v18  ;;  %v4571_v17 = vld [vmem:[%s5848_s8 + $0x3e8] ss:$16 sps:$4 sm:$0xff]   ;;  %v4576_v18 = vld [vmem:[%s5848_s8 + $0x3c4] ss:$16 sps:$4 sm:$0xff]  }
 0x2b1   : > { %2599 = vmatprep.subr.bf16.mxu1 %v4492_v19  ;;  %2640 = vmatprep.subr.bf16.mxu0 %v4495_v20  ;;  %v4579_v19 = vld [vmem:[%s5848_s8 + $0x3cc] ss:$16 sps:$4 sm:$0xff]   ;;  %v4574_v20 = vld [vmem:[%s5848_s8 + $0x3c0] ss:$16 sps:$4 sm:$0xff]  }
 0x2b4   : > { %2600 = vmatpush1.bf16.msra.mxu1 %v4490_v21  ;;  %2641 = vmatpush1.bf16.msra.mxu0 %v4493_v22  ;;  %v4577_v21 = vld [vmem:[%s5848_s8 + $0x3c8] ss:$16 sps:$4 sm:$0xff]   ;;  %v2911_v22 = vld [vmem:[#allocation4 + $0x5] sm:$0x1] }
 0x2b5   : > { %2601 = vmatprep.subr.bf16.mxu1 %v4498_v23  ;;  %2642 = vmatprep.subr.bf16.mxu0 %v4501_v24  ;;  %v2912_v23 = vpack.c.bf16 %v2911_v22, %v2911_v22  ;;  %v4580_v24 = vld [vmem:[%s5850_s10 + $0x78] sm:$0xff]  }
 0x2b8   : > { %2602 = vmatpush1.bf16.msra.mxu1 %v4496_v25  ;;  %2643 = vmatpush1.bf16.msra.mxu0 %v4499_v26  ;;  %v4581_v25 = vld [vmem:[%s5850_s10 + $0xf8] sm:$0xff]  }
 0x2b9   : > { %2603 = vmatprep.subr.bf16.mxu1 %v4504_v27  ;;  %2644 = vmatprep.subr.bf16.mxu0 %v4507_v28  ;;  %v4582_v26 = vld [vmem:[%s5850_s10 + $0x38] sm:$0xff]   ;;  %v4584_v28 = vld [vmem:[%s5850_s10 + $0x70] sm:$0xff]  }
 0x2ba   : > { %v4583_v27 = vld [vmem:[%s5850_s10 + $0xb8] sm:$0xff]  }
 0x2bc   : > { %2604 = vmatpush1.bf16.msra.mxu1 %v4502_v29  ;;  %2645 = vmatpush1.bf16.msra.mxu0 %v4505_v30  ;;  %v4585_v29 = vld [vmem:[%s5850_s10 + $0xf0] sm:$0xff]  }
 0x2bd   : > { %2829 = vmatprep.subr.bf16.mxu1 %v4510_v31  ;;  %2870 = vmatprep.subr.bf16.mxu0 %v4513_v32  ;;  %v4586_v30 = vld [vmem:[%s5850_s10 + $0x30] sm:$0xff]   ;;  %v4588_v32 = vld [vmem:[%s5850_s10 + $0x68] sm:$0xff]  }
 0x2be   : > { %v4587_v31 = vld [vmem:[%s5850_s10 + $0xb0] sm:$0xff]  }
 0x2bf   : > { %4018 = vmatmul.mubr.msk.bf16.vlgmr.msra.gmra.mxu1 %vm726_vm1, %v2440_v36  ;;  %4019 = vmatmul.mubr.msk.bf16.vlgmr.msra.gmra.mxu0 %vm726_vm1, %v2440_v36  ;;  %v4592_v36 = vld [vmem:[%s5850_s10 + $0x60] sm:$0xff]  }
 0x2c0   : > { %2830 = vmatpush1.bf16.msra.mxu1 %v4508_v34  ;;  %2871 = vmatpush1.bf16.msra.mxu0 %v4511_v35  ;;  %v4590_v34 = vld [vmem:[%s5850_s10 + $0x28] sm:$0xff]  }
 0x2c1   : > { %2831 = vmatprep.subr.bf16.mxu1 %v4516_v37  ;;  %2872 = vmatprep.subr.bf16.mxu0 %v4519_v38  ;;  %v4591_v35 = vld [vmem:[%s5850_s10 + $0xa8] sm:$0xff]   ;;  %v4593_v37 = vld [vmem:[%s5850_s10 + $0xe0] sm:$0xff]  }
 0x2c2   : > { %2857 = vmatprep.mubr.bf16.mxu1 %v4711_v0  ;;  %2898 = vmatprep.mubr.bf16.mxu0 %v4711_v0  ;;  %v4594_v38 = vld [vmem:[%s5850_s10 + $0x20] sm:$0xff]  }
 0x2c4   : > { %2832 = vmatpush1.bf16.msra.mxu1 %v4514_v39  ;;  %2873 = vmatpush1.bf16.msra.mxu0 %v4517_v40  ;;  %v4595_v39 = vld [vmem:[%s5850_s10 + $0xa0] sm:$0xff]   ;;  %v4596_v40 = vld [vmem:[%s5850_s10 + $0x58] sm:$0xff]  }
 0x2c5   : > { %2833 = vmatprep.subr.bf16.mxu1 %v4522_v41  ;;  %2874 = vmatprep.subr.bf16.mxu0 %v4525_v42  ;;  %v4597_v41 = vld [vmem:[%s5850_s10 + $0xd8] sm:$0xff]  }
 0x2c6   : > { %v4598_v42 = vld [vmem:[%s5850_s10 + $0x18] sm:$0xff]  }
 0x2c8   : > { %2834 = vmatpush1.bf16.msra.mxu1 %v4520_v43  ;;  %2875 = vmatpush1.bf16.msra.mxu0 %v4523_v44  ;;  %v4599_v43 = vld [vmem:[%s5850_s10 + $0x98] sm:$0xff]   ;;  %v4600_v44 = vld [vmem:[%s5850_s10 + $0x50] sm:$0xff]  }
 0x2c9   : > { %2835 = vmatprep.subr.bf16.mxu1 %v4528_v45  ;;  %2876 = vmatprep.subr.bf16.mxu0 %v4531_v46  ;;  %v4601_v45 = vld [vmem:[%s5850_s10 + $0xd0] sm:$0xff]  }
 0x2ca   : > { %v4602_v46 = vld [vmem:[%s5850_s10 + $0x10] sm:$0xff]  }
 0x2cc   : > { %2836 = vmatpush1.bf16.msra.mxu1 %v4526_v47  ;;  %2877 = vmatpush1.bf16.msra.mxu0 %v4529_v48  ;;  %v4603_v47 = vld [vmem:[%s5850_s10 + $0x90] sm:$0xff]   ;;  %v4604_v48 = vld [vmem:[%s5850_s10 + $0x48] sm:$0xff]  }
 0x2cd   : > { %2837 = vmatprep.subr.bf16.mxu1 %v4534_v49  ;;  %2878 = vmatprep.subr.bf16.mxu0 %v4537_v50  ;;  %v4605_v49 = vld [vmem:[%s5850_s10 + $0xc8] sm:$0xff]  }
 0x2ce   : > { %v4606_v50 = vld [vmem:[%s5850_s10 + $0x8] sm:$0xff]  }
 0x2d0   : > { %2838 = vmatpush1.bf16.msra.mxu1 %v4532_v51  ;;  %2879 = vmatpush1.bf16.msra.mxu0 %v4535_v52  ;;  %v4607_v51 = vld [vmem:[%s5850_s10 + $0x88] sm:$0xff]   ;;  %v4608_v52 = vld [vmem:[%s5850_s10 + $0x40] sm:$0xff]  }
 0x2d1   : > { %2839 = vmatprep.subr.bf16.mxu1 %v4540_v53  ;;  %2880 = vmatprep.subr.bf16.mxu0 %v4543_v54  ;;  %v4609_v53 = vld [vmem:[%s5850_s10 + $0xc0] sm:$0xff]  }
 0x2d2   : > { %v4610_v54 = vld [vmem:[%s5850_s10] sm:$0xff]  }
 0x2d4   : > { %2840 = vmatpush1.bf16.msra.mxu1 %v4538_v55  ;;  %2881 = vmatpush1.bf16.msra.mxu0 %v4541_v56  ;;  %v4611_v55 = vld [vmem:[%s5850_s10 + $0x80] sm:$0xff]  }
 0x2d5   : > { %3065 = vmatprep.subr.bf16.mxu1 %v4546_v57  ;;  %3106 = vmatprep.subr.bf16.mxu0 %v4549_v58 }
 0x2d7   : > { %4068 = vmatmul.mubr.msk.bf16.vlgmr.msra.gmra.mxu1 %vm726_vm1, %v2676_v1  ;;  %4069 = vmatmul.mubr.msk.bf16.vlgmr.msra.gmra.mxu0 %vm726_vm1, %v2676_v1 }
 0x2d8   : > { %3066 = vmatpush1.bf16.msra.mxu1 %v4544_v61  ;;  %3107 = vmatpush1.bf16.msra.mxu0 %v4547_v62 }
 0x2d9   : > { %3067 = vmatprep.subr.bf16.mxu1 %v4552_v3  ;;  %3108 = vmatprep.subr.bf16.mxu0 %v4555_v4 }
 0x2da   : > { %3093 = vmatprep.mubr.bf16.mxu1 %v4711_v0  ;;  %3134 = vmatprep.mubr.bf16.mxu0 %v4711_v0  ;;  %v4567_v0 = vld [vmem:[%s5848_s8 + $0x40c] ss:$16 sps:$4 sm:$0xff]  }
 0x2dc   : > { %3068 = vmatpush1.bf16.msra.mxu1 %v4550_v5  ;;  %3109 = vmatpush1.bf16.msra.mxu0 %v4553_v6 }
 0x2dd   : > { %3069 = vmatprep.subr.bf16.mxu1 %v4558_v7  ;;  %3110 = vmatprep.subr.bf16.mxu0 %v4561_v8 }
 0x2e0   : > { %3070 = vmatpush1.bf16.msra.mxu1 %v4556_v9  ;;  %3111 = vmatpush1.bf16.msra.mxu0 %v4559_v10 }
 0x2e1   : > { %3071 = vmatprep.subr.bf16.mxu1 %v4564_v11  ;;  %3112 = vmatprep.subr.bf16.mxu0 %v4567_v0 }
 0x2e4   : > { %3072 = vmatpush1.bf16.msra.mxu1 %v4562_v12  ;;  %3113 = vmatpush1.bf16.msra.mxu0 %v4565_v13 }
 0x2e5   : > { %3073 = vmatprep.subr.bf16.mxu1 %v4570_v14  ;;  %3114 = vmatprep.subr.bf16.mxu0 %v4573_v15 }
 0x2e8   : > { %3074 = vmatpush1.bf16.msra.mxu1 %v4568_v16  ;;  %3115 = vmatpush1.bf16.msra.mxu0 %v4571_v17 }
 0x2e9   : > { %3075 = vmatprep.subr.bf16.mxu1 %v4576_v18  ;;  %3116 = vmatprep.subr.bf16.mxu0 %v4579_v19 }
 0x2ec   : > { %3076 = vmatpush1.bf16.msra.mxu1 %v4574_v20  ;;  %3117 = vmatpush1.bf16.msra.mxu0 %v4577_v21 }
 0x2ed   : > { %4156 = vmatprep.subr.bf16.mxu1 %v4580_v24  ;;  %4178 = vmatprep.subr.bf16.mxu0 %v4581_v25 }
 0x2ef   : > { %4118 = vmatmul.mubr.msk.bf16.vlgmr.msra.gmra.mxu1 %vm726_vm1, %v2912_v23  ;;  %4119 = vmatmul.mubr.msk.bf16.vlgmr.msra.gmra.mxu0 %vm726_vm1, %v2912_v23 }
 0x2f0   : > { %4157 = vmatpush3.bf16.msra.mxu1 %v4582_v26  ;;  %4179 = vmatpush3.bf16.msra.mxu0 %v4583_v27 }
 0x2f1   : > { %4158 = vmatprep.subr.bf16.mxu1 %v4584_v28  ;;  %4180 = vmatprep.subr.bf16.mxu0 %v4585_v29 }
 0x2f4   : > { %4159 = vmatpush3.bf16.msra.mxu1 %v4586_v30  ;;  %4181 = vmatpush3.bf16.msra.mxu0 %v4587_v31 }
 0x2f5   : > { %4160 = vmatprep.subr.bf16.mxu1 %v4588_v32  ;;  %4182 = vmatprep.subr.bf16.mxu0 %v4589_v33 }
 0x2f8   : > { %4161 = vmatpush3.bf16.msra.mxu1 %v4590_v34  ;;  %4183 = vmatpush3.bf16.msra.mxu0 %v4591_v35 }
 0x2f9   : > { %4162 = vmatprep.subr.bf16.mxu1 %v4592_v36  ;;  %4184 = vmatprep.subr.bf16.mxu0 %v4593_v37 }
 0x2fc   : > { %4163 = vmatpush3.bf16.msra.mxu1 %v4594_v38  ;;  %4185 = vmatpush3.bf16.msra.mxu0 %v4595_v39 }
 0x2fd   : > { %4164 = vmatprep.subr.bf16.mxu1 %v4596_v40  ;;  %4186 = vmatprep.subr.bf16.mxu0 %v4597_v41 }
 0x300   : > { %4165 = vmatpush3.bf16.msra.mxu1 %v4598_v42  ;;  %4187 = vmatpush3.bf16.msra.mxu0 %v4599_v43  ;;  %v3159_v43 = vsub.s32 2, %v4977_v60 }
 0x301   : > { %4166 = vmatprep.subr.bf16.mxu1 %v4600_v44  ;;  %4188 = vmatprep.subr.bf16.mxu0 %v4601_v45  ;;  %v3147_v44 = vld [vmem:[%s5849_s9] sm:$0xf]  ;;  %v3163_v45 = vsub.s32 3, %v4977_v60 }
 0x304   : > { %4167 = vmatpush3.bf16.msra.mxu1 %v4602_v46  ;;  %4189 = vmatpush3.bf16.msra.mxu0 %v4603_v47 }
 0x305   : > { %4168 = vmatprep.subr.bf16.mxu1 %v4604_v48  ;;  %4190 = vmatprep.subr.bf16.mxu0 %v4605_v49  ;;  %v3152_v48 = vrot.slane %v3147_v44, %v4980_v63  ;;  %v3160_v49 = vrot.slane %v3147_v44, %v3159_v43 }
 0x308   : > { %4169 = vmatpush3.bf16.msra.mxu1 %v4606_v50  ;;  %4191 = vmatpush3.bf16.msra.mxu0 %v4607_v51 }
 0x309   : > { %4170 = vmatprep.subr.bf16.mxu1 %v4608_v52  ;;  %4192 = vmatprep.subr.bf16.mxu0 %v4609_v53 }
 0x30c   : > { %4171 = vmatpush3.bf16.msra.mxu1 %v4610_v54  ;;  %4193 = vmatpush3.bf16.msra.mxu0 %v4611_v55 }
 0x337   : > { %v1950_v56 = vpop.f32.mrf.mxu1  ;;  %v1991_v57 = vpop.f32.mrf.mxu0 }
 0x339   : > { %v1952_v58 = vpop.f32.mrf.mxu1  ;;  %v1993_v59 = vpop.f32.mrf.mxu0 }
 0x33b   : > { %v1954_v61 = vpop.f32.mrf.mxu1  ;;  %v1995_v62 = vpop.f32.mrf.mxu0 }
 0x33d   : > { %v1955_v1 = vpop.f32.mrf.mxu1  ;;  %v1996_v3 = vpop.f32.mrf.mxu0 }
 0x34f   : > { %v2155_v4 = vpop.f32.mrf.mxu1  ;;  %v2196_v5 = vpop.f32.mrf.mxu0 }
 0x350   : > { %v2156_v6 = vadd.f32 %v2155_v4, %v1950_v56  ;;  %v2197_v7 = vadd.f32 %v2196_v5, %v1991_v57  ;;  %v3156_v56 = vrot.slane %v3147_v44, %v4986_v2  ;;  %v3164_v57 = vrot.slane %v3147_v44, %v3163_v45 }
 0x351   : > { %v2157_v8 = vpop.f32.mrf.mxu1  ;;  %v2198_v9 = vpop.f32.mrf.mxu0 }
 0x352   : > { %v2158_v10 = vadd.f32 %v2157_v8, %v1952_v58  ;;  %v2199_v11 = vadd.f32 %v2198_v9, %v1993_v59 }
 0x353   : > { %v2159_v0 = vpop.f32.mrf.mxu1  ;;  %v2200_v12 = vpop.f32.mrf.mxu0 }
 0x355   : > { %v2160_v13 = vpop.f32.mrf.mxu1  ;;  %v2201_v14 = vpop.f32.mrf.mxu0 }
 0x367   : > { %v2387_v15 = vpop.f32.mrf.mxu1  ;;  %v2428_v16 = vpop.f32.mrf.mxu0 }
 0x368   : > { %v2435_v17 = vadd.f32 %v2387_v15, %v2156_v6  ;;  %v2437_v18 = vadd.f32 %v2428_v16, %v2197_v7 }
 0x369   : > { %v2389_v19 = vpop.f32.mrf.mxu1  ;;  %v2430_v20 = vpop.f32.mrf.mxu0 }
 0x36a   : > { %v2436_v21 = vadd.f32 %v2389_v19, %v2158_v10  ;;  %v2438_v22 = vadd.f32 %v2430_v20, %v2199_v11  ;;  %v3245_v20 = vld [vmem:[%s5851_s11] sm:$0x1] }
 0x36b   : > { %v2391_v23 = vpop.f32.mrf.mxu1  ;;  %v2432_v24 = vpop.f32.mrf.mxu0 }
 0x36d   : > { %v2392_v25 = vpop.f32.mrf.mxu1  ;;  %v2433_v26 = vpop.f32.mrf.mxu0 }
 0x37f   : > { %v2623_v27 = vpop.f32.mrf.mxu1  ;;  %v2664_v28 = vpop.f32.mrf.mxu0 }
 0x380   : > { %v2671_v46 = vadd.f32 %v2623_v27, %v2435_v17  ;;  %v2673_v47 = vadd.f32 %v2664_v28, %v2437_v18 }
 0x381   : > { %v2625_v29 = vpop.f32.mrf.mxu1  ;;  %v2666_v30 = vpop.f32.mrf.mxu0 }
 0x382   : > { %v2672_v50 = vadd.f32 %v2625_v29, %v2436_v21  ;;  %v2674_v51 = vadd.f32 %v2666_v30, %v2438_v22 }
 0x383   : > { %v2627_v31 = vpop.f32.mrf.mxu1  ;;  %v2668_v32 = vpop.f32.mrf.mxu0 }
 0x385   : > { %v2628_v33 = vpop.f32.mrf.mxu1  ;;  %v2669_v34 = vpop.f32.mrf.mxu0 }
 0x397   : > { %v2859_v35 = vpop.f32.mrf.mxu1  ;;  %v2900_v36 = vpop.f32.mrf.mxu0 }
 0x398   : > { %v2907_v52 = vadd.f32 %v2859_v35, %v2671_v46  ;;  %v2909_v53 = vadd.f32 %v2900_v36, %v2673_v47 }
 0x399   : > { %v2861_v37 = vpop.f32.mrf.mxu1  ;;  %v2902_v38 = vpop.f32.mrf.mxu0 }
 0x39a   : > { %v2908_v58 = vadd.f32 %v2861_v37, %v2672_v50  ;;  %v2910_v59 = vadd.f32 %v2902_v38, %v2674_v51 }
 0x39b   : > { %v2863_v39 = vpop.f32.mrf.mxu1  ;;  %v2904_v40 = vpop.f32.mrf.mxu0 }
 0x39d   : > { %v2864_v41 = vpop.f32.mrf.mxu1  ;;  %v2905_v42 = vpop.f32.mrf.mxu0 }
 0x3af   : > { %v3095_v54 = vpop.f32.mrf.mxu1  ;;  %v3136_v55 = vpop.f32.mrf.mxu0 }
 0x3b0   : > { %v3143_v61 = vadd.f32 %v3095_v54, %v2907_v52  ;;  %v3145_v62 = vadd.f32 %v3136_v55, %v2909_v53 }
 0x3b1   : > { %v3097_v1 = vpop.f32.mrf.mxu1  ;;  %v3138_v60 = vpop.f32.mrf.mxu0 }
 0x3b2   : > { %v3169_v3 = vadd.f32 %v3152_v48, %v3143_v61  ;;  %v3171_v4 = vadd.f32 %v3160_v49, %v3145_v62  ;;  %v3144_v5 = vadd.f32 %v3097_v1, %v2908_v58  ;;  %v3146_v63 = vadd.f32 %v3138_v60, %v2910_v59 }
 0x3b3   : > { %v3099_v6 = vpop.f32.mrf.mxu1  ;;  %v3140_v7 = vpop.f32.mrf.mxu0 }
 0x3b4   : > { %v3170_v8 = vadd.f32 %v3156_v56, %v3144_v5  ;;  %v3172_v9 = vadd.f32 %v3164_v57, %v3146_v63  ;;  %v3173_v10 = vmax.f32 %v3169_v3, 0.0  ;;  %v3175_v11 = vmax.f32 %v3171_v4, 0.0 }
 0x3b5   : > { %v3100_v0 = vpop.f32.mrf.mxu1  ;;  %v3141_v12 = vpop.f32.mrf.mxu0 }
 0x3b6   : > { %v3174_v2 = vmax.f32 %v3170_v8, 0.0  ;;  %v3176_v13 = vmax.f32 %v3172_v9, 0.0  ;;  %v3177_v16 = vpack.c.bf16 %v3173_v10, %v3173_v10  ;;  %v3179_v17 = vpack.c.bf16 %v3175_v11, %v3175_v11 }
 0x3b8   : > { %v3178_v14 = vpack.c.bf16 %v3174_v2, %v3174_v2  ;;  %v3180_v15 = vpack.c.bf16 %v3176_v13, %v3176_v13 }
 0x3ba   : > { %3470 = vmatprep.mubr.bf16.mxu1 %v3178_v14  ;;  %3510 = vmatprep.mubr.bf16.mxu0 %v3180_v15 }
 0x3bb   : > { %3471 = vmatmul.mubr.bf16.vlgmr.msra.gmra.mxu1 %v3177_v16  ;;  %3511 = vmatmul.mubr.bf16.vlgmr.msra.gmra.mxu0 %v3179_v17 }
 0x47b   : > { %v4172_v18 = vpop.f32.mrf.mxu1  ;;  %v4194_v19 = vpop.f32.mrf.mxu0 }
 0x47d   : > { %v4173_v21 = vpop.f32.mrf.mxu1  ;;  %v4195_v22 = vpop.f32.mrf.mxu0 }
 0x47e   : > { %v4174_v23 = vadd.f32 %v4173_v21, %v4172_v18  ;;  %v4196_v27 = vadd.f32 %v4195_v22, %v4194_v19 }
 0x47f   : > { %v4175_v24 = vpop.f32.mrf.mxu1  ;;  %v4197_v25 = vpop.f32.mrf.mxu0 }
 0x480   : > { %v3473_v26 = vadd.f32 %v4174_v23, %v3245_v20 }
 0x481   : > { %v4176_v28 = vpop.f32.mrf.mxu1  ;;  %v4198_v29 = vpop.f32.mrf.mxu0 }
 0x482   : > { %v3513_v30 = vadd.f32 %v4196_v27, %v3473_v26 }
 0x484   : > { %v3519_v31 = vsel %vm3518_vm4, %v3513_v30, -inf }
 0x485   : > { %3520 = vmax.xlane.f32.xlu0 %v3519_v31 }
 0x50e   : > { %v3521_v32 = vpop.xlane.xlu0 %3520 }
 0x50f   : > { %v3522_v33 = vsub.f32 %v3513_v30, %v3521_v32 }
 0x511   : > { %v3523_v34 = vmul.f32 1.442695, %v3522_v33 }
 0x513   : > { %4612 = vpow2.f32 %v3523_v34 }
 0x520   : > { %v4613_v35 = vpop.eup %4612 }
 0x521   : > { %v3525_v36 = vsel %vm3518_vm4, %v4613_v35, 0.0 }
 0x522   : > { %3526 = vadd.xlane.f32.xlu0 %v3525_v36 }
 0x5ab   : > { %v3527_v37 = vpop.xlane.xlu0 %3526 }
 0x5ac   : > { %4614 = vrcp.f32 %v3527_v37 }
 0x5b9   : > { %v4615_v38 = vpop.eup %4614 }
 0x5ba   : > { %v3529_v39 = vmul.f32 %v4615_v38, %v4613_v35 }
 0x5bc   : > { %3530 = vst.msk [vmem:[%s420_s16] sm:$0x1] %vm3518_vm4, %v3529_v39 }
 0x5bd   : > { %4655 = shalt.err (!%p4652_p0)
}
 0x5be   : > { %s4656_s29 = scalar_lea.hbm %s3542_s1, 16  ;;  %s4660_s16 = scalar_lea.hbm %s5852_s12, 32 }
 0x5bf   : > { %p4657_p1 = scmp.ne.s32.totalorder %s3542_s1, %s4656_s29  ;;  %p4661_p4 = scmp.lt.s32.totalorder %s3542_s1, %s5852_s12 }
 0x5c0   : > { %p4662_p7 = scmp.lt.s32.totalorder %s4660_s16, %s4656_s29 }
 0x5c1   : > { %p4658_p2 = pnand %p4657_p1, %p4816_p5 }
 0x5c2   : > { %p4663_p6 = por %p4662_p7, %p4661_p4 }
 0x5c3   : > { %p4659_p3 = pneg %p4658_p2 }
 0x5c5   : > { %p4664_p8 = pnand %p4663_p6, %p4659_p3 }
 0x5c7   : > { %4667 = shalt.err (!%p4664_p8)
}
 0x5c8   : > { %4204 = dma.vmem_to_hbm [thread:$0]  (%p4816_p5), %s3545_s17, 16, %s3542_s1, %s3532_s2  }
 0x5c9 PF: > { %p4216_p9 = scmp.ge.s32.totalorder %s4706_s24, 2  ;;  %s3556_s18 = sand.u32 1, %s4694_s21  }
 0x5ca   : > { %p5862_p10 = scmp.ne.s32.totalorder %s5857_s14, 0  ;;  %s3557_s26 = scalar_lea.sflag [#allocation7], %s3556_s18 }
 0x5cc   : > { %p4211_p11 = pnand %p4216_p9, %p5862_p10 }
 0x5ce   : > { %p4212_p12 = pneg %p4211_p11 }
 0x5d0   : > { %4689 = dma.done.wait (%p4212_p12), %s3557_s26, 16  }
 0x5d1   : > { %4691 = vsyncadd (%p4212_p12), %s3557_s26, 4294967280  ;;  %p23_p13 = scmp.ge.s32.totalorder %s4803_s27, 4   ;;  %s5863_s21 = smov %s4698_s22 }
 0x5d2   : > { %s5864_s22 = smov %s4702_s23  ;;  %s5865_s23 = smov %s4814_s30 }
 0x5d3   : > { %s5866_s24 = smov %s4803_s27  ;;  %25 = sbr.rel (!%p23_p13) target bundleno = 8 (0x8), region = 120 }
 0x5d8   :  { %3561 = vsyncpa [#allocation6], 1 }
 0x5d9   :  { %3563 = vsyncpa [#allocation6 + $0x1], 1 }
 0x5da   :  { %3564 = vsyncpa [#allocation7], 1 }
 0x5db   :  { %3566 = vsyncpa [#allocation7 + $0x1], 1 }

</bundles_post_ra>
